<compile_context>
chip_gen: v7x
topology: tpu7x:2x2x1
jax: 0.10.0
libtpu: 0.0.40
codegen_flags: <defaults>
</compile_context>

<pallas_src>
import functools

import jax
import jax.numpy as jnp
from jax import lax
from jax.experimental import pallas as pl
from jax.experimental.pallas import tpu as pltpu

V = 11                      # embedding_input (vocab)
E = 32                      # embedding_size
H = E // 2                  # LSTM hidden size per direction (2H == E)
MASK_TOKEN = 0
IH_DTYPE = jnp.bfloat16     # hoisted input-to-hidden slab dtype (f32 for exact)


def _sigmoid(x):
    # exp -> EUP; approx reciprocal -> EUP vrcp (keeps the VPU free on the
    # serial recurrence path).
    return pl.reciprocal(1.0 + jnp.exp(-x), approx=True)


def _gate_update(gates, c_prev):
    # gates: (4H, bn) pre-activations, rows ordered [i, f, o, g]
    sg = _sigmoid(gates[0:3 * H, :])            # one contiguous 3H sigmoid block
    gg = jnp.tanh(gates[3 * H:4 * H, :])        # trailing H tanh block
    c_new = sg[H:2 * H, :] * c_prev + sg[0:H, :] * gg
    h_new = sg[2 * H:3 * H, :] * jnp.tanh(c_new)
    return h_new, c_new


def _extractor_kernel(x_ref, u_ref, tableT_ref, whhf_ref, whhb_ref,
                      wout_ref, bout_ref, out_ref,
                      ihf_ref, ihb_ref, hf_ref, hb_ref,
                      *, S, bn, greedy):
    f32 = jnp.float32
    G = 4 * H

    # ---- prologue: embedding + input-to-hidden, both directions -------------
    # One (8H, V) @ (V, bn) matmul per timestep, off the serial recurrence.
    tableT = tableT_ref[...]                                        # (8H, V)

    def prologue(s, carry):
        x_s = x_ref[pl.ds(s, 1), :]                                 # (1, bn) i32
        onehot = (lax.broadcasted_iota(jnp.int32, (V, bn), 0)
                  == x_s).astype(f32)                               # (V, bn)
        pre = jnp.dot(tableT, onehot, preferred_element_type=f32)   # (8H, bn)
        ihf_ref[s] = pre[0:G, :].astype(IH_DTYPE)
        ihb_ref[s] = pre[G:2 * G, :].astype(IH_DTYPE)
        return carry

    lax.fori_loop(0, S, prologue, 0, unroll=min(S, 4))

    # ---- recurrence: fused fwd/bwd step, two small matmuls, no concats ------
    whhf = whhf_ref[...]                                            # (4H, H)
    whhb = whhb_ref[...]                                            # (4H, H)

    def step(s, carry):
        hf, hb, cf, cb = carry                                      # (H, bn) each
        pre_f = ihf_ref[s].astype(f32)                              # time s
        pre_b = ihb_ref[S - 1 - s].astype(f32)                      # time S-1-s
        gates_f = pre_f + jnp.dot(whhf, hf, preferred_element_type=f32)
        gates_b = pre_b + jnp.dot(whhb, hb, preferred_element_type=f32)
        hf, cf = _gate_update(gates_f, cf)
        hb, cb = _gate_update(gates_b, cb)
        hf_ref[s] = hf                                              # fwd out @ s
        hb_ref[S - 1 - s] = hb                                      # bwd out @ S-1-s
        return hf, hb, cf, cb

    zeros = jnp.zeros((H, bn), f32)
    rec_unroll = min(S, 8) if bn <= 128 else min(S, 2)   # cap unroll: vreg pressure
    lax.fori_loop(0, S, step, (zeros, zeros, zeros, zeros), unroll=rec_unroll)

    # ---- epilogue: logits / softmax / mask, all lane-dense ------------------
    wout = wout_ref[...]                                            # (2, 2H)
    bout = bout_ref[...]                                            # (2, 1)
    wout_f = wout[:, 0:H]
    wout_b = wout[:, H:2 * H]

    def epilogue(s, carry):
        logits = (jnp.dot(wout_f, hf_ref[s], preferred_element_type=f32)
                  + jnp.dot(wout_b, hb_ref[s], preferred_element_type=f32)
                  + bout)                                           # (2, bn)
        l0 = logits[0:1, :]
        l1 = logits[1:2, :]
        p1 = _sigmoid(l1 - l0)                                      # softmax[..., 1]
        p0 = 1.0 - p1
        if greedy:
            m_bool = l1 > l0                                        # argmax, ties -> 0
        else:
            m_bool = u_ref[pl.ds(s, 1), :] < p1                     # ~ multinomial
        m_f = m_bool.astype(f32)
        chosen = jnp.where(m_bool, p1, p0)                          # gather(policy, mask)
        x_f = x_ref[pl.ds(s, 1), :].astype(f32)
        masked = x_f * m_f + (1.0 - m_f) * float(MASK_TOKEN)
        out_ref[s] = jnp.concatenate(
            [logits, p0, p1, chosen, m_f, masked, m_f], axis=0)     # (8, bn)
        return carry

    lax.fori_loop(0, S, epilogue, 0, unroll=min(S, 4))


def init_params(key):
    """Deterministic synthetic parameters with PyTorch-default-like ranges."""
    ks = jax.random.split(key, 11)
    bound = 1.0 / (H ** 0.5)
    lb = 1.0 / (E ** 0.5)

    def u(k, shape, b):
        return jax.random.uniform(k, shape, jnp.float32, -b, b)

    return {
        "emb":   jax.random.normal(ks[0], (V, E), jnp.float32),
        "wih_f": u(ks[1], (4 * H, E), bound),
        "whh_f": u(ks[2], (4 * H, H), bound),
        "bih_f": u(ks[3], (4 * H,), bound),
        "bhh_f": u(ks[4], (4 * H,), bound),
        "wih_b": u(ks[5], (4 * H, E), bound),
        "whh_b": u(ks[6], (4 * H, H), bound),
        "bih_b": u(ks[7], (4 * H,), bound),
        "bhh_b": u(ks[8], (4 * H,), bound),
        "wout":  u(ks[9], (2, E), lb),
        "bout":  u(ks[10], (2,), lb),
    }


def _perm(w):
    # PyTorch gate row order [i, f, g, o] -> kernel order [i, f, o, g]
    return jnp.concatenate([w[0:H], w[H:2 * H], w[3 * H:4 * H], w[2 * H:3 * H]],
                           axis=0)


def _prep_weights(params):
    """Wrapper-side weight plumbing: gate permute, bias fold, feature-major."""
    emb_t = params["emb"].T                                   # (E, V)

    def table_dir(wih, bih, bhh):
        # column v = perm(W_ih) @ emb[v] + perm(b_ih + b_hh)
        return jnp.dot(_perm(wih), emb_t) + _perm(bih + bhh)[:, None]   # (4H, V)

    tableT = jnp.concatenate(
        [table_dir(params["wih_f"], params["bih_f"], params["bhh_f"]),
         table_dir(params["wih_b"], params["bih_b"], params["bhh_b"])],
        axis=0)                                               # (8H, V)

    whhf = _perm(params["whh_f"])                             # (4H, H)
    whhb = _perm(params["whh_b"])                             # (4H, H)
    wout = params["wout"]                                     # (2, 2H)
    bout = params["bout"].reshape(2, 1)                       # (2, 1)
    return tableT, whhf, whhb, wout, bout


def _pick_batch_tile(N):
    # lane-dense batch tiles: multiple of 128 lanes that divides N, else the
    # whole batch in one tile (toy / ragged sizes).
    for bn in (512, 256, 128):
        if N % bn == 0:
            return bn
    return N


def reinforce_rational_extractor_lm(x, params, *, greedy=False, seed=0,
                                    batch_tile=None):
    S, N = x.shape
    tableT, whhf, whhb, wout, bout = _prep_weights(params)

    bn = _pick_batch_tile(N) if batch_tile is None else int(batch_tile)
    if N % bn != 0 or not (bn == N or bn % 128 == 0):
        raise ValueError(f"batch tile {bn} must divide N={N} and be a multiple "
                         "of 128 (or the whole batch)")
    grid = (N // bn,)

    x_i = x.astype(jnp.int32)
    if greedy:
        u = jnp.zeros((S, N), jnp.float32)                    # unused in greedy mode
    else:
        u = jax.random.uniform(jax.random.PRNGKey(seed), (S, N), jnp.float32)

    kern = functools.partial(_extractor_kernel, S=S, bn=bn, greedy=greedy)

    def const_spec(shape):
        # weights: full block, constant index_map -> stays resident across grid
        return pl.BlockSpec(shape, lambda j: (0, 0))

    out = pl.pallas_call(
        kern,
        out_shape=jax.ShapeDtypeStruct((S, 8, N), jnp.float32),
        grid=grid,
        in_specs=[
            pl.BlockSpec((S, bn), lambda j: (0, j)),          # x
            pl.BlockSpec((S, bn), lambda j: (0, j)),          # uniforms
            const_spec(tableT.shape),                         # (8H, V)
            const_spec(whhf.shape),                           # (4H, H)
            const_spec(whhb.shape),                           # (4H, H)
            const_spec(wout.shape),                           # (2, 2H)
            const_spec(bout.shape),                           # (2, 1)
        ],
        out_specs=pl.BlockSpec((S, 8, bn), lambda j: (0, 0, j)),
        scratch_shapes=[
            pltpu.VMEM((S, 4 * H, bn), IH_DTYPE),             # fwd ih slab
            pltpu.VMEM((S, 4 * H, bn), IH_DTYPE),             # bwd ih slab
            pltpu.VMEM((S, H, bn), jnp.float32),              # fwd hidden outputs
            pltpu.VMEM((S, H, bn), jnp.float32),              # bwd hidden outputs
        ],
        compiler_params=pltpu.CompilerParams(
            dimension_semantics=("parallel",),                # megacore / v7x split
            vmem_limit_bytes=32 * 1024 * 1024,                # explicit scoped VMEM
        ),
    )(x_i, u, tableT, whhf, whhb, wout, bout)

    # fused (S, 8, N) slab -> PyTorch-shaped dict (plain XLA slicing)
    return {
        "mask_logits": jnp.stack([out[:, 0, :], out[:, 1, :]], axis=-1),   # (S,N,2)
        "policy": jnp.stack([out[:, 2, :], out[:, 3, :]], axis=-1),        # (S,N,2)
        "chosen_policy": out[:, 4, :][..., None],                          # (S,N,1)
        "mask": out[:, 5, :] > 0.5,                                        # (S,N) bool
        "masked_input": out[:, 6, :].astype(jnp.int32),                    # (S,N)
    }


if __name__ == "__main__":
    key = jax.random.PRNGKey(0)
    kx, kp, kx_big = jax.random.split(key, 3)

    params = init_params(kp)

    # toy shape from the module: seq=2, batch=8 (single whole-batch tile)
    x = jax.random.randint(kx, (2, 8), 0, V, dtype=jnp.int32)
    out_greedy = reinforce_rational_extractor_lm(x, params, greedy=True)
    out_sample = reinforce_rational_extractor_lm(x, params, greedy=False, seed=1234)

    # larger batch exercising the lane-dense parallel batch grid (2 tiles of 128)
    x_big = jax.random.randint(kx_big, (4, 256), 0, V, dtype=jnp.int32)
    out_big = reinforce_rational_extractor_lm(x_big, params, greedy=False, seed=7,
                                              batch_tile=128)

    jax.block_until_ready((out_greedy, out_sample, out_big))

    assert out_greedy["mask_logits"].shape == (2, 8, 2)
    assert out_big["policy"].shape == (4, 256, 2)
    assert bool(jnp.all(jnp.isfinite(out_big["policy"])))
    assert out_big["masked_input"].dtype == jnp.int32

    print("KERNEL_OK")
</pallas_src>

<mosaic_0001>
module attributes {stable_mosaic.version = 11 : i64} {
  func.func @_extractor_kernel(%arg0: i32, %arg1: memref<2x8xi32, #tpu.memory_space<vmem>>, %arg2: memref<2x8xf32, #tpu.memory_space<vmem>>, %arg3: memref<128x11xf32, #tpu.memory_space<vmem>>, %arg4: memref<64x16xf32, #tpu.memory_space<vmem>>, %arg5: memref<64x16xf32, #tpu.memory_space<vmem>>, %arg6: memref<2x32xf32, #tpu.memory_space<vmem>>, %arg7: memref<2x1xf32, #tpu.memory_space<vmem>>, %arg8: memref<2x8x8xf32, #tpu.memory_space<vmem>>, %arg9: memref<2x64x8xbf16, #tpu.memory_space<vmem>>, %arg10: memref<2x64x8xbf16, #tpu.memory_space<vmem>>, %arg11: memref<2x16x8xf32, #tpu.memory_space<vmem>>, %arg12: memref<2x16x8xf32, #tpu.memory_space<vmem>>) attributes {dimension_semantics = [#tpu.dimension_semantics<parallel>], iteration_bounds = array<i64: 1>, scalar_prefetch = 0 : i64, scratch_operands = 4 : i64, tpu.core_type = #tpu.core_type<tc>, window_params = [{transform_indices = @transform_0, window_bounds = array<i64: 2, 8>}, {transform_indices = @transform_1, window_bounds = array<i64: 2, 8>}, {pipeline_mode = #tpu.pipeline_mode<synchronous>, transform_indices = @transform_2, window_bounds = array<i64: 128, 11>}, {pipeline_mode = #tpu.pipeline_mode<synchronous>, transform_indices = @transform_3, window_bounds = array<i64: 64, 16>}, {pipeline_mode = #tpu.pipeline_mode<synchronous>, transform_indices = @transform_4, window_bounds = array<i64: 64, 16>}, {pipeline_mode = #tpu.pipeline_mode<synchronous>, transform_indices = @transform_5, window_bounds = array<i64: 2, 32>}, {pipeline_mode = #tpu.pipeline_mode<synchronous>, transform_indices = @transform_6, window_bounds = array<i64: 2, 1>}, {transform_indices = @transform_7, window_bounds = array<i64: 2, 8, 8>}]} {
    %c0 = arith.constant 0 : index
    %c0_0 = arith.constant 0 : index
    %0 = vector.load %arg3[%c0, %c0_0] : memref<128x11xf32, #tpu.memory_space<vmem>>, vector<128x11xf32>
    %c0_i32 = arith.constant 0 : i32
    %1 = arith.index_cast %c0_i32 : i32 to index
    %c0_1 = arith.constant 0 : index
    %2 = vector.load %arg1[%1, %c0_1] : memref<2x8xi32, #tpu.memory_space<vmem>>, vector<1x8xi32>
    %3 = tpu.iota {dimensions = array<i32: 0>} : vector<11x8xi32>
    %4 = vector.broadcast %2 : vector<1x8xi32> to vector<11x8xi32>
    %5 = arith.cmpi eq, %3, %4 : vector<11x8xi32>
    %6 = arith.extui %5 : vector<11x8xi1> to vector<11x8xi32>
    %7 = arith.sitofp %6 : vector<11x8xi32> to vector<11x8xf32>
    %cst = arith.constant dense<0.000000e+00> : vector<128x8xf32>
    %8 = tpu.matmul %0, %7, %cst {dimension_numbers = #tpu.dot_dimension_numbers<[1], [0], [0], [1], [0, 0, 1, 1], [], []>} : vector<128x11xf32>, vector<11x8xf32>, vector<128x8xf32> -> vector<128x8xf32>
    %9 = vector.extract_strided_slice %8 {offsets = [0, 0], sizes = [64, 8], strides = [1, 1]} : vector<128x8xf32> to vector<64x8xf32>
    %10 = arith.truncf %9 : vector<64x8xf32> to vector<64x8xbf16>
    %11 = arith.index_cast %c0_i32 : i32 to index
    %c0_2 = arith.constant 0 : index
    %c0_3 = arith.constant 0 : index
    %12 = vector.load %arg9[%11, %c0_2, %c0_3] : memref<2x64x8xbf16, #tpu.memory_space<vmem>>, vector<1x64x8xbf16>
    %13 = vector.shape_cast %12 : vector<1x64x8xbf16> to vector<64x8xbf16>
    %14 = vector.shape_cast %10 : vector<64x8xbf16> to vector<1x64x8xbf16>
    tpu.vector_store %arg9[%11, %c0_2, %c0_3], %14 {strides = array<i32>} : memref<2x64x8xbf16, #tpu.memory_space<vmem>>, vector<1x64x8xbf16>,
    %15 = vector.extract_strided_slice %8 {offsets = [64, 0], sizes = [64, 8], strides = [1, 1]} : vector<128x8xf32> to vector<64x8xf32>
    %16 = arith.truncf %15 : vector<64x8xf32> to vector<64x8xbf16>
    %17 = arith.index_cast %c0_i32 : i32 to index
    %c0_4 = arith.constant 0 : index
    %c0_5 = arith.constant 0 : index
    %18 = vector.load %arg10[%17, %c0_4, %c0_5] : memref<2x64x8xbf16, #tpu.memory_space<vmem>>, vector<1x64x8xbf16>
    %19 = vector.shape_cast %18 : vector<1x64x8xbf16> to vector<64x8xbf16>
    %20 = vector.shape_cast %16 : vector<64x8xbf16> to vector<1x64x8xbf16>
    tpu.vector_store %arg10[%17, %c0_4, %c0_5], %20 {strides = array<i32>} : memref<2x64x8xbf16, #tpu.memory_space<vmem>>, vector<1x64x8xbf16>,
    %c1_i32 = arith.constant 1 : i32
    %21 = arith.index_cast %c1_i32 : i32 to index
    %c0_6 = arith.constant 0 : index
    %22 = vector.load %arg1[%21, %c0_6] : memref<2x8xi32, #tpu.memory_space<vmem>>, vector<1x8xi32>
    %23 = tpu.iota {dimensions = array<i32: 0>} : vector<11x8xi32>
    %24 = vector.broadcast %22 : vector<1x8xi32> to vector<11x8xi32>
    %25 = arith.cmpi eq, %23, %24 : vector<11x8xi32>
    %26 = arith.extui %25 : vector<11x8xi1> to vector<11x8xi32>
    %27 = arith.sitofp %26 : vector<11x8xi32> to vector<11x8xf32>
    %cst_7 = arith.constant dense<0.000000e+00> : vector<128x8xf32>
    %28 = tpu.matmul %0, %27, %cst_7 {dimension_numbers = #tpu.dot_dimension_numbers<[1], [0], [0], [1], [0, 0, 1, 1], [], []>} : vector<128x11xf32>, vector<11x8xf32>, vector<128x8xf32> -> vector<128x8xf32>
    %29 = vector.extract_strided_slice %28 {offsets = [0, 0], sizes = [64, 8], strides = [1, 1]} : vector<128x8xf32> to vector<64x8xf32>
    %30 = arith.truncf %29 : vector<64x8xf32> to vector<64x8xbf16>
    %31 = arith.index_cast %c1_i32 : i32 to index
    %c0_8 = arith.constant 0 : index
    %c0_9 = arith.constant 0 : index
    %32 = vector.load %arg9[%31, %c0_8, %c0_9] : memref<2x64x8xbf16, #tpu.memory_space<vmem>>, vector<1x64x8xbf16>
    %33 = vector.shape_cast %32 : vector<1x64x8xbf16> to vector<64x8xbf16>
    %34 = vector.shape_cast %30 : vector<64x8xbf16> to vector<1x64x8xbf16>
    tpu.vector_store %arg9[%31, %c0_8, %c0_9], %34 {strides = array<i32>} : memref<2x64x8xbf16, #tpu.memory_space<vmem>>, vector<1x64x8xbf16>,
    %35 = vector.extract_strided_slice %28 {offsets = [64, 0], sizes = [64, 8], strides = [1, 1]} : vector<128x8xf32> to vector<64x8xf32>
    %36 = arith.truncf %35 : vector<64x8xf32> to vector<64x8xbf16>
    %37 = arith.index_cast %c1_i32 : i32 to index
    %c0_10 = arith.constant 0 : index
    %c0_11 = arith.constant 0 : index
    %38 = vector.load %arg10[%37, %c0_10, %c0_11] : memref<2x64x8xbf16, #tpu.memory_space<vmem>>, vector<1x64x8xbf16>
    %39 = vector.shape_cast %38 : vector<1x64x8xbf16> to vector<64x8xbf16>
    %40 = vector.shape_cast %36 : vector<64x8xbf16> to vector<1x64x8xbf16>
    tpu.vector_store %arg10[%37, %c0_10, %c0_11], %40 {strides = array<i32>} : memref<2x64x8xbf16, #tpu.memory_space<vmem>>, vector<1x64x8xbf16>,
    %c2_i32 = arith.constant 2 : i32
    %c0_12 = arith.constant 0 : index
    %c0_13 = arith.constant 0 : index
    %41 = vector.load %arg4[%c0_12, %c0_13] : memref<64x16xf32, #tpu.memory_space<vmem>>, vector<64x16xf32>
    %c0_14 = arith.constant 0 : index
    %c0_15 = arith.constant 0 : index
    %42 = vector.load %arg5[%c0_14, %c0_15] : memref<64x16xf32, #tpu.memory_space<vmem>>, vector<64x16xf32>
    %cst_16 = arith.constant 0.000000e+00 : f32
    %43 = vector.broadcast %cst_16 : f32 to vector<16x8xf32>
    %c0_i32_17 = arith.constant 0 : i32
    %44 = arith.index_cast %c0_i32_17 : i32 to index
    %c0_18 = arith.constant 0 : index
    %c0_19 = arith.constant 0 : index
    %45 = vector.load %arg9[%44, %c0_18, %c0_19] : memref<2x64x8xbf16, #tpu.memory_space<vmem>>, vector<1x64x8xbf16>
    %46 = vector.shape_cast %45 : vector<1x64x8xbf16> to vector<64x8xbf16>
    %47 = arith.extf %46 : vector<64x8xbf16> to vector<64x8xf32>
    %c1_i32_20 = arith.constant 1 : i32
    %48 = arith.subi %c1_i32_20, %c0_i32_17 : i32
    %49 = arith.index_cast %48 : i32 to index
    %c0_21 = arith.constant 0 : index
    %c0_22 = arith.constant 0 : index
    %50 = vector.load %arg10[%49, %c0_21, %c0_22] : memref<2x64x8xbf16, #tpu.memory_space<vmem>>, vector<1x64x8xbf16>
    %51 = vector.shape_cast %50 : vector<1x64x8xbf16> to vector<64x8xbf16>
    %52 = arith.extf %51 : vector<64x8xbf16> to vector<64x8xf32>
    %cst_23 = arith.constant dense<0.000000e+00> : vector<64x8xf32>
    %53 = tpu.matmul %41, %43, %cst_23 {dimension_numbers = #tpu.dot_dimension_numbers<[1], [0], [0], [1], [0, 0, 1, 1], [], []>} : vector<64x16xf32>, vector<16x8xf32>, vector<64x8xf32> -> vector<64x8xf32>
    %54 = arith.addf %47, %53 : vector<64x8xf32>
    %cst_24 = arith.constant dense<0.000000e+00> : vector<64x8xf32>
    %55 = tpu.matmul %42, %43, %cst_24 {dimension_numbers = #tpu.dot_dimension_numbers<[1], [0], [0], [1], [0, 0, 1, 1], [], []>} : vector<64x16xf32>, vector<16x8xf32>, vector<64x8xf32> -> vector<64x8xf32>
    %56 = arith.addf %52, %55 : vector<64x8xf32>
    %57 = vector.extract_strided_slice %54 {offsets = [0, 0], sizes = [48, 8], strides = [1, 1]} : vector<64x8xf32> to vector<48x8xf32>
    %cst_25 = arith.constant 0.000000e+00 : f32
    %58 = vector.broadcast %cst_25 : f32 to vector<48x8xf32>
    %59 = arith.subf %58, %57 : vector<48x8xf32>
    %60 = math.exp %59 : vector<48x8xf32>
    %cst_26 = arith.constant 1.000000e+00 : f32
    %61 = vector.broadcast %cst_26 : f32 to vector<48x8xf32>
    %62 = arith.addf %61, %60 : vector<48x8xf32>
    %63 = tpu.reciprocal %62 {approx = true} : vector<48x8xf32> -> vector<48x8xf32>
    %64 = vector.extract_strided_slice %54 {offsets = [48, 0], sizes = [16, 8], strides = [1, 1]} : vector<64x8xf32> to vector<16x8xf32>
    %65 = math.tanh %64 : vector<16x8xf32>
    %66 = vector.extract_strided_slice %63 {offsets = [16, 0], sizes = [16, 8], strides = [1, 1]} : vector<48x8xf32> to vector<16x8xf32>
    %67 = arith.mulf %66, %43 : vector<16x8xf32>
    %68 = vector.extract_strided_slice %63 {offsets = [0, 0], sizes = [16, 8], strides = [1, 1]} : vector<48x8xf32> to vector<16x8xf32>
    %69 = arith.mulf %68, %65 : vector<16x8xf32>
    %70 = arith.addf %67, %69 : vector<16x8xf32>
    %71 = vector.extract_strided_slice %63 {offsets = [32, 0], sizes = [16, 8], strides = [1, 1]} : vector<48x8xf32> to vector<16x8xf32>
    %72 = math.tanh %70 : vector<16x8xf32>
    %73 = arith.mulf %71, %72 : vector<16x8xf32>
    %74 = vector.extract_strided_slice %56 {offsets = [0, 0], sizes = [48, 8], strides = [1, 1]} : vector<64x8xf32> to vector<48x8xf32>
    %cst_27 = arith.constant 0.000000e+00 : f32
    %75 = vector.broadcast %cst_27 : f32 to vector<48x8xf32>
    %76 = arith.subf %75, %74 : vector<48x8xf32>
    %77 = math.exp %76 : vector<48x8xf32>
    %cst_28 = arith.constant 1.000000e+00 : f32
    %78 = vector.broadcast %cst_28 : f32 to vector<48x8xf32>
    %79 = arith.addf %78, %77 : vector<48x8xf32>
    %80 = tpu.reciprocal %79 {approx = true} : vector<48x8xf32> -> vector<48x8xf32>
    %81 = vector.extract_strided_slice %56 {offsets = [48, 0], sizes = [16, 8], strides = [1, 1]} : vector<64x8xf32> to vector<16x8xf32>
    %82 = math.tanh %81 : vector<16x8xf32>
    %83 = vector.extract_strided_slice %80 {offsets = [16, 0], sizes = [16, 8], strides = [1, 1]} : vector<48x8xf32> to vector<16x8xf32>
    %84 = arith.mulf %83, %43 : vector<16x8xf32>
    %85 = vector.extract_strided_slice %80 {offsets = [0, 0], sizes = [16, 8], strides = [1, 1]} : vector<48x8xf32> to vector<16x8xf32>
    %86 = arith.mulf %85, %82 : vector<16x8xf32>
    %87 = arith.addf %84, %86 : vector<16x8xf32>
    %88 = vector.extract_strided_slice %80 {offsets = [32, 0], sizes = [16, 8], strides = [1, 1]} : vector<48x8xf32> to vector<16x8xf32>
    %89 = math.tanh %87 : vector<16x8xf32>
    %90 = arith.mulf %88, %89 : vector<16x8xf32>
    %91 = arith.index_cast %c0_i32_17 : i32 to index
    %c0_29 = arith.constant 0 : index
    %c0_30 = arith.constant 0 : index
    %92 = vector.load %arg11[%91, %c0_29, %c0_30] : memref<2x16x8xf32, #tpu.memory_space<vmem>>, vector<1x16x8xf32>
    %93 = vector.shape_cast %92 : vector<1x16x8xf32> to vector<16x8xf32>
    %94 = vector.shape_cast %73 : vector<16x8xf32> to vector<1x16x8xf32>
    tpu.vector_store %arg11[%91, %c0_29, %c0_30], %94 {strides = array<i32>} : memref<2x16x8xf32, #tpu.memory_space<vmem>>, vector<1x16x8xf32>,
    %c1_i32_31 = arith.constant 1 : i32
    %95 = arith.subi %c1_i32_31, %c0_i32_17 : i32
    %96 = arith.index_cast %95 : i32 to index
    %c0_32 = arith.constant 0 : index
    %c0_33 = arith.constant 0 : index
    %97 = vector.load %arg12[%96, %c0_32, %c0_33] : memref<2x16x8xf32, #tpu.memory_space<vmem>>, vector<1x16x8xf32>
    %98 = vector.shape_cast %97 : vector<1x16x8xf32> to vector<16x8xf32>
    %99 = vector.shape_cast %90 : vector<16x8xf32> to vector<1x16x8xf32>
    tpu.vector_store %arg12[%96, %c0_32, %c0_33], %99 {strides = array<i32>} : memref<2x16x8xf32, #tpu.memory_space<vmem>>, vector<1x16x8xf32>,
    %c1_i32_34 = arith.constant 1 : i32
    %100 = arith.index_cast %c1_i32_34 : i32 to index
    %c0_35 = arith.constant 0 : index
    %c0_36 = arith.constant 0 : index
    %101 = vector.load %arg9[%100, %c0_35, %c0_36] : memref<2x64x8xbf16, #tpu.memory_space<vmem>>, vector<1x64x8xbf16>
    %102 = vector.shape_cast %101 : vector<1x64x8xbf16> to vector<64x8xbf16>
    %103 = arith.extf %102 : vector<64x8xbf16> to vector<64x8xf32>
    %c1_i32_37 = arith.constant 1 : i32
    %104 = arith.subi %c1_i32_37, %c1_i32_34 : i32
    %105 = arith.index_cast %104 : i32 to index
    %c0_38 = arith.constant 0 : index
    %c0_39 = arith.constant 0 : index
    %106 = vector.load %arg10[%105, %c0_38, %c0_39] : memref<2x64x8xbf16, #tpu.memory_space<vmem>>, vector<1x64x8xbf16>
    %107 = vector.shape_cast %106 : vector<1x64x8xbf16> to vector<64x8xbf16>
    %108 = arith.extf %107 : vector<64x8xbf16> to vector<64x8xf32>
    %cst_40 = arith.constant dense<0.000000e+00> : vector<64x8xf32>
    %109 = tpu.matmul %41, %73, %cst_40 {dimension_numbers = #tpu.dot_dimension_numbers<[1], [0], [0], [1], [0, 0, 1, 1], [], []>} : vector<64x16xf32>, vector<16x8xf32>, vector<64x8xf32> -> vector<64x8xf32>
    %110 = arith.addf %103, %109 : vector<64x8xf32>
    %cst_41 = arith.constant dense<0.000000e+00> : vector<64x8xf32>
    %111 = tpu.matmul %42, %90, %cst_41 {dimension_numbers = #tpu.dot_dimension_numbers<[1], [0], [0], [1], [0, 0, 1, 1], [], []>} : vector<64x16xf32>, vector<16x8xf32>, vector<64x8xf32> -> vector<64x8xf32>
    %112 = arith.addf %108, %111 : vector<64x8xf32>
    %113 = vector.extract_strided_slice %110 {offsets = [0, 0], sizes = [48, 8], strides = [1, 1]} : vector<64x8xf32> to vector<48x8xf32>
    %cst_42 = arith.constant 0.000000e+00 : f32
    %114 = vector.broadcast %cst_42 : f32 to vector<48x8xf32>
    %115 = arith.subf %114, %113 : vector<48x8xf32>
    %116 = math.exp %115 : vector<48x8xf32>
    %cst_43 = arith.constant 1.000000e+00 : f32
    %117 = vector.broadcast %cst_43 : f32 to vector<48x8xf32>
    %118 = arith.addf %117, %116 : vector<48x8xf32>
    %119 = tpu.reciprocal %118 {approx = true} : vector<48x8xf32> -> vector<48x8xf32>
    %120 = vector.extract_strided_slice %110 {offsets = [48, 0], sizes = [16, 8], strides = [1, 1]} : vector<64x8xf32> to vector<16x8xf32>
    %121 = math.tanh %120 : vector<16x8xf32>
    %122 = vector.extract_strided_slice %119 {offsets = [16, 0], sizes = [16, 8], strides = [1, 1]} : vector<48x8xf32> to vector<16x8xf32>
    %123 = arith.mulf %122, %70 : vector<16x8xf32>
    %124 = vector.extract_strided_slice %119 {offsets = [0, 0], sizes = [16, 8], strides = [1, 1]} : vector<48x8xf32> to vector<16x8xf32>
    %125 = arith.mulf %124, %121 : vector<16x8xf32>
    %126 = arith.addf %123, %125 : vector<16x8xf32>
    %127 = vector.extract_strided_slice %119 {offsets = [32, 0], sizes = [16, 8], strides = [1, 1]} : vector<48x8xf32> to vector<16x8xf32>
    %128 = math.tanh %126 : vector<16x8xf32>
    %129 = arith.mulf %127, %128 : vector<16x8xf32>
    %130 = vector.extract_strided_slice %112 {offsets = [0, 0], sizes = [48, 8], strides = [1, 1]} : vector<64x8xf32> to vector<48x8xf32>
    %cst_44 = arith.constant 0.000000e+00 : f32
    %131 = vector.broadcast %cst_44 : f32 to vector<48x8xf32>
    %132 = arith.subf %131, %130 : vector<48x8xf32>
    %133 = math.exp %132 : vector<48x8xf32>
    %cst_45 = arith.constant 1.000000e+00 : f32
    %134 = vector.broadcast %cst_45 : f32 to vector<48x8xf32>
    %135 = arith.addf %134, %133 : vector<48x8xf32>
    %136 = tpu.reciprocal %135 {approx = true} : vector<48x8xf32> -> vector<48x8xf32>
    %137 = vector.extract_strided_slice %112 {offsets = [48, 0], sizes = [16, 8], strides = [1, 1]} : vector<64x8xf32> to vector<16x8xf32>
    %138 = math.tanh %137 : vector<16x8xf32>
    %139 = vector.extract_strided_slice %136 {offsets = [16, 0], sizes = [16, 8], strides = [1, 1]} : vector<48x8xf32> to vector<16x8xf32>
    %140 = arith.mulf %139, %87 : vector<16x8xf32>
    %141 = vector.extract_strided_slice %136 {offsets = [0, 0], sizes = [16, 8], strides = [1, 1]} : vector<48x8xf32> to vector<16x8xf32>
    %142 = arith.mulf %141, %138 : vector<16x8xf32>
    %143 = arith.addf %140, %142 : vector<16x8xf32>
    %144 = vector.extract_strided_slice %136 {offsets = [32, 0], sizes = [16, 8], strides = [1, 1]} : vector<48x8xf32> to vector<16x8xf32>
    %145 = math.tanh %143 : vector<16x8xf32>
    %146 = arith.mulf %144, %145 : vector<16x8xf32>
    %147 = arith.index_cast %c1_i32_34 : i32 to index
    %c0_46 = arith.constant 0 : index
    %c0_47 = arith.constant 0 : index
    %148 = vector.load %arg11[%147, %c0_46, %c0_47] : memref<2x16x8xf32, #tpu.memory_space<vmem>>, vector<1x16x8xf32>
    %149 = vector.shape_cast %148 : vector<1x16x8xf32> to vector<16x8xf32>
    %150 = vector.shape_cast %129 : vector<16x8xf32> to vector<1x16x8xf32>
    tpu.vector_store %arg11[%147, %c0_46, %c0_47], %150 {strides = array<i32>} : memref<2x16x8xf32, #tpu.memory_space<vmem>>, vector<1x16x8xf32>,
    %c1_i32_48 = arith.constant 1 : i32
    %151 = arith.subi %c1_i32_48, %c1_i32_34 : i32
    %152 = arith.index_cast %151 : i32 to index
    %c0_49 = arith.constant 0 : index
    %c0_50 = arith.constant 0 : index
    %153 = vector.load %arg12[%152, %c0_49, %c0_50] : memref<2x16x8xf32, #tpu.memory_space<vmem>>, vector<1x16x8xf32>
    %154 = vector.shape_cast %153 : vector<1x16x8xf32> to vector<16x8xf32>
    %155 = vector.shape_cast %146 : vector<16x8xf32> to vector<1x16x8xf32>
    tpu.vector_store %arg12[%152, %c0_49, %c0_50], %155 {strides = array<i32>} : memref<2x16x8xf32, #tpu.memory_space<vmem>>, vector<1x16x8xf32>,
    %c2_i32_51 = arith.constant 2 : i32
    %c0_52 = arith.constant 0 : index
    %c0_53 = arith.constant 0 : index
    %156 = vector.load %arg6[%c0_52, %c0_53] : memref<2x32xf32, #tpu.memory_space<vmem>>, vector<2x32xf32>
    %c0_54 = arith.constant 0 : index
    %c0_55 = arith.constant 0 : index
    %157 = vector.load %arg7[%c0_54, %c0_55] : memref<2x1xf32, #tpu.memory_space<vmem>>, vector<2x1xf32>
    %158 = vector.extract_strided_slice %156 {offsets = [0, 0], sizes = [2, 16], strides = [1, 1]} : vector<2x32xf32> to vector<2x16xf32>
    %159 = vector.extract_strided_slice %156 {offsets = [0, 16], sizes = [2, 16], strides = [1, 1]} : vector<2x32xf32> to vector<2x16xf32>
    %c0_i32_56 = arith.constant 0 : i32
    %160 = arith.index_cast %c0_i32_56 : i32 to index
    %c0_57 = arith.constant 0 : index
    %c0_58 = arith.constant 0 : index
    %161 = vector.load %arg11[%160, %c0_57, %c0_58] : memref<2x16x8xf32, #tpu.memory_space<vmem>>, vector<1x16x8xf32>
    %162 = vector.shape_cast %161 : vector<1x16x8xf32> to vector<16x8xf32>
    %cst_59 = arith.constant dense<0.000000e+00> : vector<2x8xf32>
    %163 = tpu.matmul %158, %162, %cst_59 {dimension_numbers = #tpu.dot_dimension_numbers<[1], [0], [0], [1], [0, 0, 1, 1], [], []>} : vector<2x16xf32>, vector<16x8xf32>, vector<2x8xf32> -> vector<2x8xf32>
    %164 = arith.index_cast %c0_i32_56 : i32 to index
    %c0_60 = arith.constant 0 : index
    %c0_61 = arith.constant 0 : index
    %165 = vector.load %arg12[%164, %c0_60, %c0_61] : memref<2x16x8xf32, #tpu.memory_space<vmem>>, vector<1x16x8xf32>
    %166 = vector.shape_cast %165 : vector<1x16x8xf32> to vector<16x8xf32>
    %cst_62 = arith.constant dense<0.000000e+00> : vector<2x8xf32>
    %167 = tpu.matmul %159, %166, %cst_62 {dimension_numbers = #tpu.dot_dimension_numbers<[1], [0], [0], [1], [0, 0, 1, 1], [], []>} : vector<2x16xf32>, vector<16x8xf32>, vector<2x8xf32> -> vector<2x8xf32>
    %168 = arith.addf %163, %167 : vector<2x8xf32>
    %169 = vector.broadcast %157 : vector<2x1xf32> to vector<2x8xf32>
    %170 = arith.addf %168, %169 : vector<2x8xf32>
    %171 = vector.extract_strided_slice %170 {offsets = [0, 0], sizes = [1, 8], strides = [1, 1]} : vector<2x8xf32> to vector<1x8xf32>
    %172 = vector.extract_strided_slice %170 {offsets = [1, 0], sizes = [1, 8], strides = [1, 1]} : vector<2x8xf32> to vector<1x8xf32>
    %173 = arith.subf %172, %171 : vector<1x8xf32>
    %cst_63 = arith.constant 0.000000e+00 : f32
    %174 = vector.broadcast %cst_63 : f32 to vector<1x8xf32>
    %175 = arith.subf %174, %173 : vector<1x8xf32>
    %176 = math.exp %175 : vector<1x8xf32>
    %cst_64 = arith.constant 1.000000e+00 : f32
    %177 = vector.broadcast %cst_64 : f32 to vector<1x8xf32>
    %178 = arith.addf %177, %176 : vector<1x8xf32>
    %179 = tpu.reciprocal %178 {approx = true} : vector<1x8xf32> -> vector<1x8xf32>
    %cst_65 = arith.constant 1.000000e+00 : f32
    %180 = vector.broadcast %cst_65 : f32 to vector<1x8xf32>
    %181 = arith.subf %180, %179 : vector<1x8xf32>
    %182 = arith.cmpf ogt, %172, %171 : vector<1x8xf32>
    %183 = arith.extui %182 : vector<1x8xi1> to vector<1x8xi32>
    %184 = arith.sitofp %183 : vector<1x8xi32> to vector<1x8xf32>
    %185 = arith.select %182, %179, %181 : vector<1x8xi1>, vector<1x8xf32>
    %186 = arith.index_cast %c0_i32_56 : i32 to index
    %c0_66 = arith.constant 0 : index
    %187 = vector.load %arg1[%186, %c0_66] : memref<2x8xi32, #tpu.memory_space<vmem>>, vector<1x8xi32>
    %188 = arith.sitofp %187 : vector<1x8xi32> to vector<1x8xf32>
    %189 = arith.mulf %188, %184 : vector<1x8xf32>
    %cst_67 = arith.constant 1.000000e+00 : f32
    %190 = vector.broadcast %cst_67 : f32 to vector<1x8xf32>
    %191 = arith.subf %190, %184 : vector<1x8xf32>
    %cst_68 = arith.constant 0.000000e+00 : f32
    %192 = vector.broadcast %cst_68 : f32 to vector<1x8xf32>
    %193 = arith.mulf %191, %192 : vector<1x8xf32>
    %194 = arith.addf %189, %193 : vector<1x8xf32>
    %195 = tpu.concatenate %170, %181, %179, %185, %184, %194, %184 in 0 : vector<2x8xf32>, vector<1x8xf32>, vector<1x8xf32>, vector<1x8xf32>, vector<1x8xf32>, vector<1x8xf32>, vector<1x8xf32> -> vector<8x8xf32>
    %196 = arith.index_cast %c0_i32_56 : i32 to index
    %c0_69 = arith.constant 0 : index
    %c0_70 = arith.constant 0 : index
    %197 = vector.load %arg8[%196, %c0_69, %c0_70] : memref<2x8x8xf32, #tpu.memory_space<vmem>>, vector<1x8x8xf32>
    %198 = vector.shape_cast %197 : vector<1x8x8xf32> to vector<8x8xf32>
    %199 = vector.shape_cast %195 : vector<8x8xf32> to vector<1x8x8xf32>
    tpu.vector_store %arg8[%196, %c0_69, %c0_70], %199 {strides = array<i32>} : memref<2x8x8xf32, #tpu.memory_space<vmem>>, vector<1x8x8xf32>,
    %c1_i32_71 = arith.constant 1 : i32
    %200 = arith.index_cast %c1_i32_71 : i32 to index
    %c0_72 = arith.constant 0 : index
    %c0_73 = arith.constant 0 : index
    %201 = vector.load %arg11[%200, %c0_72, %c0_73] : memref<2x16x8xf32, #tpu.memory_space<vmem>>, vector<1x16x8xf32>
    %202 = vector.shape_cast %201 : vector<1x16x8xf32> to vector<16x8xf32>
    %cst_74 = arith.constant dense<0.000000e+00> : vector<2x8xf32>
    %203 = tpu.matmul %158, %202, %cst_74 {dimension_numbers = #tpu.dot_dimension_numbers<[1], [0], [0], [1], [0, 0, 1, 1], [], []>} : vector<2x16xf32>, vector<16x8xf32>, vector<2x8xf32> -> vector<2x8xf32>
    %204 = arith.index_cast %c1_i32_71 : i32 to index
    %c0_75 = arith.constant 0 : index
    %c0_76 = arith.constant 0 : index
    %205 = vector.load %arg12[%204, %c0_75, %c0_76] : memref<2x16x8xf32, #tpu.memory_space<vmem>>, vector<1x16x8xf32>
    %206 = vector.shape_cast %205 : vector<1x16x8xf32> to vector<16x8xf32>
    %cst_77 = arith.constant dense<0.000000e+00> : vector<2x8xf32>
    %207 = tpu.matmul %159, %206, %cst_77 {dimension_numbers = #tpu.dot_dimension_numbers<[1], [0], [0], [1], [0, 0, 1, 1], [], []>} : vector<2x16xf32>, vector<16x8xf32>, vector<2x8xf32> -> vector<2x8xf32>
    %208 = arith.addf %203, %207 : vector<2x8xf32>
    %209 = vector.broadcast %157 : vector<2x1xf32> to vector<2x8xf32>
    %210 = arith.addf %208, %209 : vector<2x8xf32>
    %211 = vector.extract_strided_slice %210 {offsets = [0, 0], sizes = [1, 8], strides = [1, 1]} : vector<2x8xf32> to vector<1x8xf32>
    %212 = vector.extract_strided_slice %210 {offsets = [1, 0], sizes = [1, 8], strides = [1, 1]} : vector<2x8xf32> to vector<1x8xf32>
    %213 = arith.subf %212, %211 : vector<1x8xf32>
    %cst_78 = arith.constant 0.000000e+00 : f32
    %214 = vector.broadcast %cst_78 : f32 to vector<1x8xf32>
    %215 = arith.subf %214, %213 : vector<1x8xf32>
    %216 = math.exp %215 : vector<1x8xf32>
    %cst_79 = arith.constant 1.000000e+00 : f32
    %217 = vector.broadcast %cst_79 : f32 to vector<1x8xf32>
    %218 = arith.addf %217, %216 : vector<1x8xf32>
    %219 = tpu.reciprocal %218 {approx = true} : vector<1x8xf32> -> vector<1x8xf32>
    %cst_80 = arith.constant 1.000000e+00 : f32
    %220 = vector.broadcast %cst_80 : f32 to vector<1x8xf32>
    %221 = arith.subf %220, %219 : vector<1x8xf32>
    %222 = arith.cmpf ogt, %212, %211 : vector<1x8xf32>
    %223 = arith.extui %222 : vector<1x8xi1> to vector<1x8xi32>
    %224 = arith.sitofp %223 : vector<1x8xi32> to vector<1x8xf32>
    %225 = arith.select %222, %219, %221 : vector<1x8xi1>, vector<1x8xf32>
    %226 = arith.index_cast %c1_i32_71 : i32 to index
    %c0_81 = arith.constant 0 : index
    %227 = vector.load %arg1[%226, %c0_81] : memref<2x8xi32, #tpu.memory_space<vmem>>, vector<1x8xi32>
    %228 = arith.sitofp %227 : vector<1x8xi32> to vector<1x8xf32>
    %229 = arith.mulf %228, %224 : vector<1x8xf32>
    %cst_82 = arith.constant 1.000000e+00 : f32
    %230 = vector.broadcast %cst_82 : f32 to vector<1x8xf32>
    %231 = arith.subf %230, %224 : vector<1x8xf32>
    %cst_83 = arith.constant 0.000000e+00 : f32
    %232 = vector.broadcast %cst_83 : f32 to vector<1x8xf32>
    %233 = arith.mulf %231, %232 : vector<1x8xf32>
    %234 = arith.addf %229, %233 : vector<1x8xf32>
    %235 = tpu.concatenate %210, %221, %219, %225, %224, %234, %224 in 0 : vector<2x8xf32>, vector<1x8xf32>, vector<1x8xf32>, vector<1x8xf32>, vector<1x8xf32>, vector<1x8xf32>, vector<1x8xf32> -> vector<8x8xf32>
    %236 = arith.index_cast %c1_i32_71 : i32 to index
    %c0_84 = arith.constant 0 : index
    %c0_85 = arith.constant 0 : index
    %237 = vector.load %arg8[%236, %c0_84, %c0_85] : memref<2x8x8xf32, #tpu.memory_space<vmem>>, vector<1x8x8xf32>
    %238 = vector.shape_cast %237 : vector<1x8x8xf32> to vector<8x8xf32>
    %239 = vector.shape_cast %235 : vector<8x8xf32> to vector<1x8x8xf32>
    tpu.vector_store %arg8[%236, %c0_84, %c0_85], %239 {strides = array<i32>} : memref<2x8x8xf32, #tpu.memory_space<vmem>>, vector<1x8x8xf32>,
    %c2_i32_86 = arith.constant 2 : i32
    return
  }
  func.func @transform_0(%arg0: i32) -> (i32, i32) {
    %c0_i32 = arith.constant 0 : i32
    %c0_i32_0 = arith.constant 0 : i32
    return %c0_i32, %arg0 : i32, i32
  }
  func.func @transform_1(%arg0: i32) -> (i32, i32) {
    %c0_i32 = arith.constant 0 : i32
    %c0_i32_0 = arith.constant 0 : i32
    return %c0_i32, %arg0 : i32, i32
  }
  func.func @transform_2(%arg0: i32) -> (i32, i32) {
    %c0_i32 = arith.constant 0 : i32
    %c0_i32_0 = arith.constant 0 : i32
    %c0_i32_1 = arith.constant 0 : i32
    return %c0_i32, %c0_i32_0 : i32, i32
  }
  func.func @transform_3(%arg0: i32) -> (i32, i32) {
    %c0_i32 = arith.constant 0 : i32
    %c0_i32_0 = arith.constant 0 : i32
    %c0_i32_1 = arith.constant 0 : i32
    return %c0_i32, %c0_i32_0 : i32, i32
  }
  func.func @transform_4(%arg0: i32) -> (i32, i32) {
    %c0_i32 = arith.constant 0 : i32
    %c0_i32_0 = arith.constant 0 : i32
    %c0_i32_1 = arith.constant 0 : i32
    return %c0_i32, %c0_i32_0 : i32, i32
  }
  func.func @transform_5(%arg0: i32) -> (i32, i32) {
    %c0_i32 = arith.constant 0 : i32
    %c0_i32_0 = arith.constant 0 : i32
    %c0_i32_1 = arith.constant 0 : i32
    return %c0_i32, %c0_i32_0 : i32, i32
  }
  func.func @transform_6(%arg0: i32) -> (i32, i32) {
    %c0_i32 = arith.constant 0 : i32
    %c0_i32_0 = arith.constant 0 : i32
    %c0_i32_1 = arith.constant 0 : i32
    return %c0_i32, %c0_i32_0 : i32, i32
  }
  func.func @transform_7(%arg0: i32) -> (i32, i32, i32) {
    %c0_i32 = arith.constant 0 : i32
    %c0_i32_0 = arith.constant 0 : i32
    %c0_i32_1 = arith.constant 0 : i32
    return %c0_i32, %c0_i32_0, %arg0 : i32, i32, i32
  }
}

</mosaic_0001>

<bundles_post_ra>
// kernel: tpu_custom_call.1
= control target key start
LH: loop header
LB: loop body
LE: loop exit
PB: predicated region body
PF: predicated region fallthrough
CT: control target
= control target key end

     0   :  { %v44_v0 = vlaneseq  ;;  %vm57_vm0 = vcmask 89088   ;;  %vm106_vm1 = vcmask 1042432   ;;  %v2128_v6 = vmov 0.0   ;;  %s2524_s0 = inlined_call_operand.vmem [shape: s32[2,8], index: 0, kind: input, shape index: {}]   ;;  %s2525_s1 = inlined_call_operand.vmem [shape: f32[2,8], index: 1, kind: input, shape index: {}]   ;;  %s2526_s2 = inlined_call_operand.vmem [shape: f32[128,11], index: 2, kind: input, shape index: {}]   ;;  %s2527_s3 = inlined_call_operand.vmem [shape: f32[64,16], index: 3, kind: input, shape index: {}]   ;;  %s2528_s4 = inlined_call_operand.vmem [shape: f32[64,16], index: 4, kind: input, shape index: {}]   ;;  %s2529_s5 = inlined_call_operand.vmem [shape: f32[2,32], index: 5, kind: input, shape index: {}]   ;;  %s2530_s6 = inlined_call_operand.vmem [shape: f32[2,1], index: 6, kind: input, shape index: {}]   ;;  %s2531_s7 = inlined_call_operand.hbm [shape: f32[2,8,8], index: 7, kind: output, shape index: {}]  }
   0x1   :  { %v27_v1 = vld [vmem:[%s2526_s2] sm:$0xff]  ;;  %v2129_v9 = vmov 1.0   ;;  %v28_v12 = vld [vmem:[%s2526_s2 + $0x8] sm:$0xff]  ;;  %v29_v13 = vld [vmem:[%s2526_s2 + $0x10] sm:$0xff] }
   0x2   :  { %v45_v2 = vshrl.u32 %v44_v0, 7  ;;  %1786 = vmatprep.mubr.msk.f32.mxu0 %vm57_vm0, %v27_v1  ;;  %1814 = vmatprep.mubr.msk.f32.mxu1 %vm57_vm0, %v27_v1  ;;  %v1616_v3 = vld [vmem:[%s2524_s0] ss:$0 sm:$0xff]  ;;  %v1637_v4 = vld [vmem:[%s2524_s0 + $0x1] ss:$0 sm:$0xff] }
   0x4   :  { %v46_v5 = vadd.s32 8, %v45_v2  ;;  %vm51_vm2 = vcmp.eq.s32.totalorder %v45_v2, %v1616_v3  ;;  %vm277_vm3 = vcmp.eq.s32.totalorder %v45_v2, %v1637_v4 }
   0x5   :  { %vm1927_vm5 = vmpackc.low %vm106_vm1, %vm51_vm2 }
   0x6   :  { %vm52_vm4 = vcmp.eq.s32.totalorder %v46_v5, %v1616_v3  ;;  %vm278_vm6 = vcmp.eq.s32.totalorder %v46_v5, %v1637_v4  ;;  %vm1933_vm7 = vmpackc.low %vm106_vm1, %vm277_vm3 }
   0x7   :  { %v1618_v7 = vsel %vm52_vm4, 1.0, %v2128_v6  ;;  %v1639_v8 = vsel %vm278_vm6, 1.0, %v2128_v6 }
   0x8   :  { %v1926_v10 = vpack.c.bf16 %v1618_v7, %v2129_v9  ;;  %v1932_v11 = vpack.c.bf16 %v1639_v8, %v2129_v9 }
   0xa   :  { %1928 = vmatprep.subr.msk.bf16.mxu0 %vm1927_vm5, %v1926_v10  ;;  %1934 = vmatprep.subr.msk.bf16.mxu1 %vm1933_vm7, %v1932_v11 }
   0xb   :  { %1931 = vmatpush3.bf16.msk.msra.mxu0 %vm1927_vm5, %v1926_v10  ;;  %1937 = vmatpush3.bf16.msk.msra.mxu1 %vm1933_vm7, %v1932_v11 }
   0xc   :  { %1852 = vmatprep.subr.mxu1 %v2128_v6  ;;  %1838 = vmatprep.subr.mxu0 %v2128_v6 }
   0xd   :  { %12 = vsyncpa [#allocation7], 0  ;;  %v30_v14 = vld [vmem:[%s2526_s2 + $0x18] sm:$0xff]  ;;  %v31_v15 = vld [vmem:[%s2526_s2 + $0x20] sm:$0xff]  ;;  %vm489_vm8 = vcmask 130048   ;;  %vm259_vm9 = vcmask 64512  }
   0xe   :  { %1787 = vmatmul.mubr.msk.f32.vlgmr.msra.gmra.mrb[0].mxu0 %vm57_vm0, %v28_v12  ;;  %1815 = vmatmul.mubr.msk.f32.vlgmr.msra.gmra.mrb[0].mxu1 %vm57_vm0, %v28_v12  ;;  %v32_v16 = vld [vmem:[%s2526_s2 + $0x28] sm:$0xff]  ;;  %v33_v17 = vld [vmem:[%s2526_s2 + $0x30] sm:$0xff]  ;;  %v34_v18 = vld [vmem:[%s2526_s2 + $0x38] sm:$0xff]  ;;  %vm2132_vm10 = vmmov 0   ;;  %vm1393_vm13 = vcmask 1041408   ;;  %vm1396_vm14 = vcmask 1043456  }
   0xf   :  { %1789 = vmatprep.mubr.msk.f32.mxu0 %vm57_vm0, %v29_v13  ;;  %1817 = vmatprep.mubr.msk.f32.mxu1 %vm57_vm0, %v29_v13  ;;  %v35_v19 = vld [vmem:[%s2526_s2 + $0x40] sm:$0xff]  ;;  %v36_v20 = vld [vmem:[%s2526_s2 + $0x48] sm:$0xff]  ;;  %v37_v21 = vld [vmem:[%s2526_s2 + $0x50] sm:$0xff]  ;;  %vm1398_vm15 = vcmask 1044480   ;;  %vm1402_vm2 = vcmask 1046528  }
  0x10   :  { %1853 = vmatpush3.msra.mxu1 %v2128_v6  ;;  %1839 = vmatpush3.msra.mxu0 %v2128_v6  ;;  %v38_v22 = vld [vmem:[%s2526_s2 + $0x58] sm:$0xff]  ;;  %v39_v23 = vld [vmem:[%s2526_s2 + $0x60] sm:$0xff]  ;;  %v40_v24 = vld [vmem:[%s2526_s2 + $0x68] sm:$0xff] }
  0x11   :  { %v41_v25 = vld [vmem:[%s2526_s2 + $0x70] sm:$0xff]  ;;  %v42_v26 = vld [vmem:[%s2526_s2 + $0x78] sm:$0xff]  ;;  %v449_v27 = vld [vmem:[%s2527_s3] sm:$0xff] }
  0x12   :  { %1790 = vmatmul.mubr.msk.f32.gmra.mrb[2].mxu0 %vm57_vm0, %v30_v14  ;;  %1818 = vmatmul.mubr.msk.f32.gmra.mrb[2].mxu1 %vm57_vm0, %v30_v14  ;;  %v457_v28 = vld [vmem:[%s2528_s4] sm:$0xff]  ;;  %v2282_v29 = vld [vmem:[%s2527_s3 + $0x8] sm:$0xff]  ;;  %v2292_v31 = vld [vmem:[%s2527_s3 + $0x10] sm:$0xff] }
  0x13   :  { %1792 = vmatprep.mubr.msk.f32.mxu0 %vm57_vm0, %v31_v15  ;;  %1820 = vmatprep.mubr.msk.f32.mxu1 %vm57_vm0, %v31_v15  ;;  %v2287_v30 = vld [vmem:[%s2528_s4 + $0x8] sm:$0xff]  ;;  %v2297_v32 = vld [vmem:[%s2528_s4 + $0x10] sm:$0xff]  ;;  %v2310_v33 = vld [vmem:[%s2527_s3 + $0x18] sm:$0xff] }
  0x14   :  { %v2315_v34 = vld [vmem:[%s2528_s4 + $0x18] sm:$0xff]  ;;  %v2320_v35 = vld [vmem:[%s2527_s3 + $0x20] sm:$0xff]  ;;  %v2338_v37 = vld [vmem:[%s2527_s3 + $0x28] sm:$0xff] }
  0x15   :  { %v2325_v36 = vld [vmem:[%s2528_s4 + $0x20] sm:$0xff]  ;;  %v2343_v38 = vld [vmem:[%s2528_s4 + $0x28] sm:$0xff]  ;;  %v2348_v39 = vld [vmem:[%s2527_s3 + $0x30] sm:$0xff] }
  0x16   :  { %1793 = vmatmul.mubr.msk.f32.gmra.mrb[4].mxu0 %vm57_vm0, %v32_v16  ;;  %1821 = vmatmul.mubr.msk.f32.gmra.mrb[4].mxu1 %vm57_vm0, %v32_v16  ;;  %v2353_v40 = vld [vmem:[%s2528_s4 + $0x30] sm:$0xff]  ;;  %v2366_v41 = vld [vmem:[%s2527_s3 + $0x38] sm:$0xff]  ;;  %v2382_v43 = vld [vmem:[%s2529_s5] sm:$0x3]  ;;  %s2130_s3 = smov 112  }
  0x17   :  { %1795 = vmatprep.mubr.msk.f32.mxu0 %vm57_vm0, %v33_v17  ;;  %1823 = vmatprep.mubr.msk.f32.mxu1 %vm57_vm0, %v33_v17  ;;  %v2371_v42 = vld [vmem:[%s2528_s4 + $0x38] sm:$0xff] }
  0x18   :  { %1199 = vrot.lane.b32.xlu0 %v2382_v43, %s2130_s3 }
  0x1a   :  { %1796 = vmatmul.mubr.msk.f32.gmra.mrb[6].mxu0 %vm57_vm0, %v34_v18  ;;  %1824 = vmatmul.mubr.msk.f32.gmra.mrb[6].mxu1 %vm57_vm0, %v34_v18 }
  0x1b   :  { %1798 = vmatprep.mubr.msk.f32.mxu0 %vm57_vm0, %v35_v19  ;;  %1826 = vmatprep.mubr.msk.f32.mxu1 %vm57_vm0, %v35_v19 }
  0x1e   :  { %1799 = vmatmul.mubr.msk.f32.gmra.mrb[8].mxu0 %vm57_vm0, %v36_v20  ;;  %1827 = vmatmul.mubr.msk.f32.gmra.mrb[8].mxu1 %vm57_vm0, %v36_v20 }
  0x1f   :  { %1801 = vmatprep.mubr.msk.f32.mxu0 %vm57_vm0, %v37_v21  ;;  %1829 = vmatprep.mubr.msk.f32.mxu1 %vm57_vm0, %v37_v21 }
  0x22   :  { %1802 = vmatmul.mubr.msk.f32.gmra.mrb[10].mxu0 %vm57_vm0, %v38_v22  ;;  %1830 = vmatmul.mubr.msk.f32.gmra.mrb[10].mxu1 %vm57_vm0, %v38_v22 }
  0x23   :  { %1804 = vmatprep.mubr.msk.f32.mxu0 %vm57_vm0, %v39_v23  ;;  %1832 = vmatprep.mubr.msk.f32.mxu1 %vm57_vm0, %v39_v23 }
  0x26   :  { %1805 = vmatmul.mubr.msk.f32.gmra.mrb[12].mxu0 %vm57_vm0, %v40_v24  ;;  %1833 = vmatmul.mubr.msk.f32.gmra.mrb[12].mxu1 %vm57_vm0, %v40_v24 }
  0x27   :  { %1807 = vmatprep.mubr.msk.f32.mxu0 %vm57_vm0, %v41_v25  ;;  %1835 = vmatprep.mubr.msk.f32.mxu1 %vm57_vm0, %v41_v25 }
  0x2a   :  { %1808 = vmatmul.mubr.msk.f32.gmra.mrb[14].mxu0 %vm57_vm0, %v42_v26  ;;  %1836 = vmatmul.mubr.msk.f32.gmra.mrb[14].mxu1 %vm57_vm0, %v42_v26  ;;  %vm1400_vm0 = vcmask 1045504  }
  0x2b   :  { %1840 = vmatprep.mubr.msk.f32.mxu0 %vm489_vm8, %v449_v27  ;;  %1854 = vmatprep.mubr.msk.f32.mxu1 %vm489_vm8, %v457_v28 }
  0x2e   :  { %1841 = vmatmul.mubr.msk.f32.vlgmr.msra.gmra.mrb[16].mxu0 %vm489_vm8, %v2282_v29  ;;  %1855 = vmatmul.mubr.msk.f32.vlgmr.msra.gmra.mrb[16].mxu1 %vm489_vm8, %v2287_v30 }
  0x2f   :  { %1843 = vmatprep.mubr.msk.f32.mxu0 %vm489_vm8, %v2292_v31  ;;  %1857 = vmatprep.mubr.msk.f32.mxu1 %vm489_vm8, %v2297_v32 }
  0x32   :  { %1844 = vmatmul.mubr.msk.f32.gmra.mrb[18].mxu0 %vm489_vm8, %v2310_v33  ;;  %1858 = vmatmul.mubr.msk.f32.gmra.mrb[18].mxu1 %vm489_vm8, %v2315_v34 }
  0x33   :  { %1846 = vmatprep.mubr.msk.f32.mxu0 %vm489_vm8, %v2320_v35  ;;  %1860 = vmatprep.mubr.msk.f32.mxu1 %vm489_vm8, %v2325_v36 }
  0x36   :  { %1847 = vmatmul.mubr.msk.f32.gmra.mrb[20].mxu0 %vm489_vm8, %v2338_v37  ;;  %1861 = vmatmul.mubr.msk.f32.gmra.mrb[20].mxu1 %vm489_vm8, %v2343_v38 }
  0x37   :  { %1849 = vmatprep.mubr.msk.f32.mxu0 %vm489_vm8, %v2348_v39  ;;  %1863 = vmatprep.mubr.msk.f32.mxu1 %vm489_vm8, %v2353_v40 }
  0x3a   :  { %1850 = vmatmul.mubr.msk.f32.gmra.mrb[22].mxu0 %vm489_vm8, %v2366_v41  ;;  %1864 = vmatmul.mubr.msk.f32.gmra.mrb[22].mxu1 %vm489_vm8, %v2371_v42 }
  0x3b   :  { %1870 = vmatprep.mubr.msk.f32.mxu0 %vm489_vm8, %v449_v27  ;;  %1886 = vmatprep.mubr.msk.f32.mxu1 %vm489_vm8, %v457_v28 }
  0xe1   :  { %v1816_v44 = vpop.f32.mrb[0].mxu1  ;;  %v1788_v45 = vpop.f32.mrb[0].mxu0 }
  0xe2   :  { %v352_v46 = vpop.f32.mrb[1].mxu1  ;;  %v176_v47 = vpop.f32.mrb[1].mxu0 }
  0xe3   :  { %v431_v48 = vpack.c.bf16 %v1816_v44, %v352_v46  ;;  %v255_v49 = vpack.c.bf16 %v1788_v45, %v176_v47 }
  0xe5   :  { %436 = vst.msk [vmem:[#allocation2 + $0x20] sm:$0xff] %vm259_vm9, %v431_v48  ;;  %260 = vst.msk [vmem:[#allocation2] sm:$0xff] %vm259_vm9, %v255_v49  ;;  %v1819_v50 = vpop.f32.mrb[2].mxu1  ;;  %v1791_v51 = vpop.f32.mrb[2].mxu0 }
  0xe6   :  { %v362_v52 = vpop.f32.mrb[3].mxu1  ;;  %v186_v53 = vpop.f32.mrb[3].mxu0 }
  0xe7   :  { %v432_v54 = vpack.c.bf16 %v1819_v50, %v362_v52  ;;  %v256_v55 = vpack.c.bf16 %v1791_v51, %v186_v53 }
  0xe9   :  { %437 = vst.msk [vmem:[#allocation2 + $0x28] sm:$0xff] %vm259_vm9, %v432_v54  ;;  %261 = vst.msk [vmem:[#allocation2 + $0x8] sm:$0xff] %vm259_vm9, %v256_v55  ;;  %v1822_v56 = vpop.f32.mrb[4].mxu1  ;;  %v1794_v57 = vpop.f32.mrb[4].mxu0 }
  0xea   :  { %v372_v58 = vpop.f32.mrb[5].mxu1  ;;  %v196_v59 = vpop.f32.mrb[5].mxu0 }
  0xeb   :  { %v433_v60 = vpack.c.bf16 %v1822_v56, %v372_v58  ;;  %v257_v61 = vpack.c.bf16 %v1794_v57, %v196_v59 }
  0xec   :  { %v465_v25 = vld [vmem:[#allocation2] sm:$0xff] }
  0xed   :  { %438 = vst.msk [vmem:[#allocation2 + $0x30] sm:$0xff] %vm259_vm9, %v433_v60  ;;  %262 = vst.msk [vmem:[#allocation2 + $0x10] sm:$0xff] %vm259_vm9, %v257_v61  ;;  %v1825_v62 = vpop.f32.mrb[6].mxu1  ;;  %v1797_v63 = vpop.f32.mrb[6].mxu0  ;;  %v470_v46 = vunpack.c.h.bf16 %v465_v25  ;;  %v469_v51 = vunpack.c.l.bf16 %v465_v25 }
  0xee   :  { %v382_v0 = vpop.f32.mrb[7].mxu1  ;;  %v206_v1 = vpop.f32.mrb[7].mxu0 }
  0xef   :  { %v434_v2 = vpack.c.bf16 %v1825_v62, %v382_v0  ;;  %v258_v3 = vpack.c.bf16 %v1797_v63, %v206_v1 }
  0xf0   :  { %v466_v48 = vld [vmem:[#allocation2 + $0x8] sm:$0xff] }
  0xf1   :  { %439 = vst.msk [vmem:[#allocation2 + $0x38] sm:$0xff] %vm259_vm9, %v434_v2  ;;  %263 = vst.msk [vmem:[#allocation2 + $0x18] sm:$0xff] %vm259_vm9, %v258_v3  ;;  %v1828_v4 = vpop.f32.mrb[8].mxu1  ;;  %v1800_v5 = vpop.f32.mrb[8].mxu0  ;;  %v472_v61 = vunpack.c.h.bf16 %v466_v48  ;;  %v471_v1 = vunpack.c.l.bf16 %v466_v48 }
  0xf2   :  { %v392_v7 = vpop.f32.mrb[9].mxu1  ;;  %v216_v8 = vpop.f32.mrb[9].mxu0 }
  0xf3   :  { %v440_v9 = vpack.c.bf16 %v1828_v4, %v392_v7  ;;  %v264_v10 = vpack.c.bf16 %v1800_v5, %v216_v8 }
  0xf4   :  { %v467_v58 = vld [vmem:[#allocation2 + $0x10] sm:$0xff] }
  0xf5   :  { %445 = vst.msk [vmem:[#allocation3 + $0x20] sm:$0xff] %vm259_vm9, %v440_v9  ;;  %268 = vst.msk [vmem:[#allocation3] sm:$0xff] %vm259_vm9, %v264_v10  ;;  %v1831_v11 = vpop.f32.mrb[10].mxu1  ;;  %v1803_v12 = vpop.f32.mrb[10].mxu0  ;;  %v474_v8 = vunpack.c.h.bf16 %v467_v58 }
  0xf6   :  { %v402_v13 = vpop.f32.mrb[11].mxu1  ;;  %v226_v14 = vpop.f32.mrb[11].mxu0 }
  0xf7   :  { %v441_v15 = vpack.c.bf16 %v1831_v11, %v402_v13  ;;  %v265_v16 = vpack.c.bf16 %v1803_v12, %v226_v14 }
  0xf9   :  { %446 = vst.msk [vmem:[#allocation3 + $0x28] sm:$0xff] %vm259_vm9, %v441_v15  ;;  %269 = vst.msk [vmem:[#allocation3 + $0x8] sm:$0xff] %vm259_vm9, %v265_v16  ;;  %v1834_v17 = vpop.f32.mrb[12].mxu1  ;;  %v1806_v18 = vpop.f32.mrb[12].mxu0 }
  0xfa   :  { %v412_v19 = vpop.f32.mrb[13].mxu1  ;;  %v236_v20 = vpop.f32.mrb[13].mxu0 }
  0xfb   :  { %v442_v21 = vpack.c.bf16 %v1834_v17, %v412_v19  ;;  %v266_v22 = vpack.c.bf16 %v1806_v18, %v236_v20 }
  0xfc   :  { %v477_v26 = vld [vmem:[#allocation3 + $0x20] sm:$0xff] }
  0xfd   :  { %447 = vst.msk [vmem:[#allocation3 + $0x30] sm:$0xff] %vm259_vm9, %v442_v21  ;;  %270 = vst.msk [vmem:[#allocation3 + $0x10] sm:$0xff] %vm259_vm9, %v266_v22  ;;  %v1837_v23 = vpop.f32.mrb[14].mxu1  ;;  %v1809_v24 = vpop.f32.mrb[14].mxu0  ;;  %v482_v47 = vunpack.c.h.bf16 %v477_v26  ;;  %v481_v52 = vunpack.c.l.bf16 %v477_v26  ;;  %v473_v22 = vunpack.c.l.bf16 %v467_v58 }
  0xfe   :  { %v422_v27 = vpop.f32.mrb[15].mxu1  ;;  %v246_v28 = vpop.f32.mrb[15].mxu0 }
  0xff   :  { %v443_v44 = vpack.c.bf16 %v1837_v23, %v422_v27  ;;  %v267_v45 = vpack.c.bf16 %v1809_v24, %v246_v28 }
 0x100   :  { %v478_v53 = vld [vmem:[#allocation3 + $0x28] sm:$0xff] }
 0x101   :  { %448 = vst.msk [vmem:[#allocation3 + $0x38] sm:$0xff] %vm259_vm9, %v443_v44  ;;  %271 = vst.msk [vmem:[#allocation3 + $0x18] sm:$0xff] %vm259_vm9, %v267_v45  ;;  %v1842_v49 = vpop.f32.mrb[16].mxu0  ;;  %v1856_v50 = vpop.f32.mrb[16].mxu1  ;;  %v484_v0 = vunpack.c.h.bf16 %v478_v53  ;;  %v483_v7 = vunpack.c.l.bf16 %v478_v53 }
 0x102   :  { %v620_v54 = vadd.f32 %v1842_v49, %v470_v46  ;;  %v757_v55 = vadd.f32 %v1856_v50, %v482_v47  ;;  %v580_v56 = vpop.f32.mrb[17].mxu0  ;;  %v717_v57 = vpop.f32.mrb[17].mxu1 }
 0x103   :  { %v619_v59 = vadd.f32 %v580_v56, %v469_v51  ;;  %v756_v60 = vadd.f32 %v717_v57, %v481_v52  ;;  %v468_v51 = vld [vmem:[#allocation2 + $0x18] sm:$0xff] }
 0x104   :  { %v765_v62 = vsub.f32 0.0, %v620_v54  ;;  %v807_v63 = vsub.f32 0.0, %v757_v55  ;;  %v479_v9 = vld [vmem:[#allocation3 + $0x30] sm:$0xff]  ;;  %v476_v58 = vunpack.c.h.bf16 %v468_v51 }
 0x105   :  { %v764_v2 = vsub.f32 0.0, %v619_v59  ;;  %v806_v3 = vsub.f32 0.0, %v756_v60  ;;  %v1845_v4 = vpop.f32.mrb[18].mxu0  ;;  %v1859_v5 = vpop.f32.mrb[18].mxu1  ;;  %v486_v26 = vunpack.c.h.bf16 %v479_v9  ;;  %v485_v53 = vunpack.c.l.bf16 %v479_v9 }
 0x106   :  { %v772_v10 = vmul.f32 1.442695, %v765_v62  ;;  %v814_v11 = vmul.f32 1.442695, %v807_v63  ;;  %v622_v12 = vadd.f32 %v1845_v4, %v472_v61  ;;  %v759_v13 = vadd.f32 %v1859_v5, %v484_v0  ;;  %v590_v14 = vpop.f32.mrb[19].mxu0  ;;  %v727_v15 = vpop.f32.mrb[19].mxu1 }
 0x107   :  { %v770_v16 = vmul.f32 1.442695, %v764_v2  ;;  %v812_v17 = vmul.f32 1.442695, %v806_v3  ;;  %v621_v18 = vadd.f32 %v590_v14, %v471_v1  ;;  %v758_v19 = vadd.f32 %v727_v15, %v483_v7 }
 0x108   :  { %1968 = vpow2.f32 %v772_v10  ;;  %v767_v20 = vsub.f32 0.0, %v622_v12  ;;  %v809_v21 = vsub.f32 0.0, %v759_v13 }
 0x109   :  { %1970 = vpow2.f32 %v814_v11  ;;  %v766_v23 = vsub.f32 0.0, %v621_v18  ;;  %v808_v24 = vsub.f32 0.0, %v758_v19  ;;  %v1848_v25 = vpop.f32.mrb[20].mxu0  ;;  %v1862_v27 = vpop.f32.mrb[20].mxu1 }
 0x10a   :  { %1972 = vpow2.f32 %v770_v16  ;;  %v776_v28 = vmul.f32 1.442695, %v767_v20  ;;  %v818_v44 = vmul.f32 1.442695, %v809_v21  ;;  %v624_v45 = vadd.f32 %v1848_v25, %v474_v8  ;;  %v600_v46 = vpop.f32.mrb[21].mxu0  ;;  %v737_v47 = vpop.f32.mrb[21].mxu1 }
 0x10b   :  { %1974 = vpow2.f32 %v812_v17  ;;  %v774_v48 = vmul.f32 1.442695, %v766_v23  ;;  %v816_v49 = vmul.f32 1.442695, %v808_v24  ;;  %v761_v50 = vadd.f32 %v1862_v27, %v486_v26  ;;  %v480_v17 = vld [vmem:[#allocation3 + $0x38] sm:$0xff] }
 0x10c   :  { %1976 = vpow2.f32 %v776_v28  ;;  %v623_v52 = vadd.f32 %v600_v46, %v473_v22  ;;  %v769_v56 = vsub.f32 0.0, %v624_v45  ;;  %v760_v57 = vadd.f32 %v737_v47, %v485_v53 }
 0x10d   :  { %1978 = vpow2.f32 %v818_v44  ;;  %v1851_v54 = vpop.f32.mrb[22].mxu0  ;;  %v1865_v55 = vpop.f32.mrb[22].mxu1  ;;  %v811_v61 = vsub.f32 0.0, %v761_v50  ;;  %v488_v22 = vunpack.c.h.bf16 %v480_v17  ;;  %v475_v24 = vunpack.c.l.bf16 %v468_v51 }
 0x10e   :  { %1980 = vpow2.f32 %v774_v48  ;;  %v610_v59 = vpop.f32.mrb[23].mxu0  ;;  %v747_v60 = vpop.f32.mrb[23].mxu1  ;;  %v768_v62 = vsub.f32 0.0, %v623_v52  ;;  %v626_v63 = vadd.f32 %v1851_v54, %v476_v58  ;;  %v780_v1 = vmul.f32 1.442695, %v769_v56 }
 0x10f   :  { %1982 = vpow2.f32 %v816_v49  ;;  %v810_v2 = vsub.f32 0.0, %v760_v57  ;;  %v822_v5 = vmul.f32 1.442695, %v811_v61  ;;  %v763_v25 = vadd.f32 %v1865_v55, %v488_v22 }
 0x110   :  { %v778_v8 = vmul.f32 1.442695, %v768_v62  ;;  %1984 = vtanh.f32 %v626_v63  ;;  %v487_v26 = vunpack.c.l.bf16 %v480_v17  ;;  %v625_v28 = vadd.f32 %v610_v59, %v475_v24 }
 0x111   :  { %v820_v11 = vmul.f32 1.442695, %v810_v2 }
 0x112   :  { %v1969_v0 = vpop.eup %1968  ;;  %v762_v45 = vadd.f32 %v747_v60, %v487_v26 }
 0x113   :  { %v1971_v3 = vpop.eup %1970  ;;  %v783_v4 = vadd.f32 1.0, %v1969_v0 }
 0x114   :  { %v1973_v7 = vpop.eup %1972  ;;  %v825_v13 = vadd.f32 1.0, %v1971_v3 }
 0x115   :  { %v1975_v9 = vpop.eup %1974  ;;  %1986 = vrcp.f32 %v783_v4  ;;  %v782_v16 = vadd.f32 1.0, %v1973_v7 }
 0x116   :  { %v1977_v10 = vpop.eup %1976  ;;  %1988 = vpow2.f32 %v780_v1  ;;  %v824_v23 = vadd.f32 1.0, %v1975_v9 }
 0x117   :  { %v1979_v12 = vpop.eup %1978  ;;  %v785_v14 = vadd.f32 1.0, %v1977_v10  ;;  %1990 = vpow2.f32 %v822_v5 }
 0x118   :  { %v1981_v15 = vpop.eup %1980  ;;  %1992 = vpow2.f32 %v778_v8  ;;  %v827_v19 = vadd.f32 1.0, %v1979_v12 }
 0x119   :  { %v1983_v18 = vpop.eup %1982  ;;  %1994 = vrcp.f32 %v785_v14  ;;  %v784_v20 = vadd.f32 1.0, %v1981_v15 }
 0x11a   :  { %1996 = vpow2.f32 %v820_v11  ;;  %v826_v21 = vadd.f32 1.0, %v1983_v18  ;;  %v1985_v27 = vpop.eup %1984 }
 0x11b   :  { %1998 = vrcp.f32 %v825_v13 }
 0x11c   :  { %2000 = vrcp.f32 %v782_v16 }
 0x11d   :  { %2002 = vrcp.f32 %v827_v19 }
 0x11e   :  { %2004 = vrcp.f32 %v784_v20 }
 0x11f   :  { %v1987_v44 = vpop.eup %1986  ;;  %2006 = vrcp.f32 %v826_v21 }
 0x120   :  { %v1989_v46 = vpop.eup %1988  ;;  %2008 = vrcp.f32 %v824_v23  ;;  %v799_v47 = vmul.f32 %v1987_v44, %v1985_v27  ;;  %v2131_v27 = vmov 0.0|0.0  }
 0x121   :  { %v1991_v48 = vpop.eup %1990  ;;  %2010 = vtanh.f32 %v763_v25  ;;  %v787_v52 = vadd.f32 1.0, %v1989_v46  ;;  %v866_v46 = vld [vmem:[#allocation3 + $0x8] sm:$0xff] }
 0x122   :  { %v1993_v49 = vpop.eup %1992  ;;  %2012 = vtanh.f32 %v625_v28  ;;  %v829_v60 = vadd.f32 1.0, %v1991_v48 }
 0x123   :  { %v1995_v50 = vpop.eup %1994  ;;  %2014 = vtanh.f32 %v762_v45  ;;  %v786_v63 = vadd.f32 1.0, %v1993_v49 }
 0x124   :  { %v1997_v51 = vpop.eup %1996  ;;  %v797_v53 = vmul.f32 0.0, %v1995_v50  ;;  %2016 = vrcp.f32 %v787_v52 }
 0x125   :  { %v1999_v54 = vpop.eup %1998  ;;  %v828_v2 = vadd.f32 1.0, %v1997_v51 }
 0x126   :  { %v2001_v55 = vpop.eup %2000  ;;  %v2401_v56 = vadd.f32 %v799_v47, %v797_v53 }
 0x127   :  { %v2003_v57 = vpop.eup %2002 }
 0x128   :  { %v2005_v58 = vpop.eup %2004  ;;  %2018 = vtanh.f32 %v2401_v56  ;;  %v839_v62 = vmul.f32 0.0, %v2003_v57 }
 0x129   :  { %v2007_v59 = vpop.eup %2006  ;;  %v796_v1 = vmul.f32 0.0, %v2005_v58  ;;  %2020 = vrcp.f32 %v829_v60 }
 0x12a   :  { %v2009_v61 = vpop.eup %2008  ;;  %v838_v4 = vmul.f32 0.0, %v2007_v59  ;;  %2022 = vrcp.f32 %v786_v63  ;;  %v872_v59 = vunpack.c.h.bf16 %v866_v46 }
 0x12b   :  { %v2011_v0 = vpop.eup %2010  ;;  %2024 = vrcp.f32 %v828_v2  ;;  %v871_v2 = vunpack.c.l.bf16 %v866_v46 }
 0x12c   :  { %v2013_v3 = vpop.eup %2012  ;;  %v841_v5 = vmul.f32 %v2011_v0, %v1999_v54 }
 0x12d   :  { %v2015_v7 = vpop.eup %2014  ;;  %v798_v8 = vmul.f32 %v2013_v3, %v2001_v55  ;;  %v867_v3 = vld [vmem:[#allocation3 + $0x10] sm:$0xff] }
 0x12e   :  { %v2404_v9 = vadd.f32 %v841_v5, %v839_v62  ;;  %v840_v10 = vmul.f32 %v2015_v7, %v2009_v61  ;;  %v2017_v13 = vpop.eup %2016 }
 0x12f   :  { %v2406_v11 = vadd.f32 %v798_v8, %v796_v1 }
 0x130   :  { %2026 = vtanh.f32 %v2404_v9  ;;  %v2409_v12 = vadd.f32 %v840_v10, %v838_v4 }
 0x131   :  { %2028 = vtanh.f32 %v2406_v11 }
 0x132   :  { %v2019_v14 = vpop.eup %2018  ;;  %2030 = vtanh.f32 %v2409_v12 }
 0x133   :  { %v805_v15 = vmul.f32 %v2019_v14, %v2017_v13  ;;  %v2021_v16 = vpop.eup %2020 }
 0x134   :  { %v2023_v17 = vpop.eup %2022 }
 0x135   :  { %849 = vst.msk [vmem:[#allocation4 + $0x8] sm:$0xff] %vm259_vm9, %v805_v15  ;;  %v2025_v18 = vpop.eup %2024 }
 0x13a   :  { %v2027_v19 = vpop.eup %2026 }
 0x13b   :  { %v2029_v20 = vpop.eup %2028  ;;  %v847_v21 = vmul.f32 %v2027_v19, %v2021_v16  ;;  %v874_v19 = vunpack.c.h.bf16 %v867_v3 }
 0x13c   :  { %v2031_v22 = vpop.eup %2030  ;;  %v804_v23 = vmul.f32 %v2029_v20, %v2023_v17  ;;  %v1195_v28 = vld [vmem:[#allocation4 + $0x8] sm:$0xff] }
 0x13d   :  { %v846_v24 = vmul.f32 %v2031_v22, %v2025_v18  ;;  %852 = vst.msk [vmem:[#allocation5 + $0x18] sm:$0xff] %vm259_vm9, %v847_v21 }
 0x13e   :  { %848 = vst.msk [vmem:[#allocation4] sm:$0xff] %vm259_vm9, %v804_v23  ;;  %v1938_v25 = vpack.c.bf16 %v805_v15, %v804_v23 }
 0x13f   :  { %851 = vst.msk [vmem:[#allocation5 + $0x10] sm:$0xff] %vm259_vm9, %v846_v24  ;;  %v1942_v26 = vpack.c.bf16 %v847_v21, %v846_v24 }
 0x140   :  { %1939 = vmatprep.subr.bf16.mxu0 %v1938_v25 }
 0x141   :  { %1943 = vmatprep.subr.bf16.mxu1 %v1942_v26  ;;  %1941 = vmatpush3.bf16.msra.mxu0 %v1938_v25 }
 0x142   :  { %1945 = vmatpush3.bf16.msra.mxu1 %v1942_v26  ;;  %1946 = vmatprep.subr.bf16.mxu0 %v2131_v27 }
 0x143   :  { %1949 = vmatprep.subr.bf16.mxu1 %v2131_v27 }
 0x144   :  { %1871 = vmatmul.mubr.msk.f32.vlgmr.msra.gmra.mrb[24].mxu0 %vm489_vm8, %v2282_v29  ;;  %v1193_v29 = vld [vmem:[%s2530_s6] sm:$0x3] }
 0x145   :  { %1887 = vmatmul.mubr.msk.f32.vlgmr.msra.gmra.mrb[24].mxu1 %vm489_vm8, %v2287_v30  ;;  %1873 = vmatprep.mubr.msk.f32.mxu0 %vm489_vm8, %v2292_v31  ;;  %v1194_v44 = vld [vmem:[#allocation4] sm:$0xff]  ;;  %v2133_v30 = vmov 0  }
 0x146   :  { %1889 = vmatprep.mubr.msk.f32.mxu1 %vm489_vm8, %v2297_v32  ;;  %v1950_v45 = vpack.c.bf16 %v1195_v28, %v1194_v44  ;;  %1967 = vset.pattern.permute.xlu0 %v2133_v30  ;;  %v853_v31 = vld [vmem:[#allocation2 + $0x20] sm:$0xff] }
 0x147   :  { %1347 = vperm.xlu0 %1967, %v1193_v29   ;;  %v865_v32 = vld [vmem:[#allocation3] sm:$0xff] }
 0x148   :  { %1874 = vmatmul.mubr.msk.f32.gmra.mrb[26].mxu0 %vm489_vm8, %v2310_v33  ;;  %1951 = vmatpush3.bf16.msra.mxu1 %v1950_v45  ;;  %v858_v33 = vunpack.c.h.bf16 %v853_v31  ;;  %v856_v45 = vld [vmem:[#allocation2 + $0x38] sm:$0xff] }
 0x149   :  { %1890 = vmatmul.mubr.msk.f32.gmra.mrb[26].mxu1 %vm489_vm8, %v2315_v34  ;;  %1876 = vmatprep.mubr.msk.f32.mxu0 %vm489_vm8, %v2320_v35  ;;  %v854_v34 = vld [vmem:[#allocation2 + $0x28] sm:$0xff] }
 0x14a   :  { %1892 = vmatprep.mubr.msk.f32.mxu1 %vm489_vm8, %v2325_v36  ;;  %1955 = vmatprep.subr.bf16.mxu1 %v2131_v27  ;;  %v870_v36 = vunpack.c.h.bf16 %v865_v32  ;;  %v860_v50 = vunpack.c.h.bf16 %v854_v34  ;;  %v859_v53 = vunpack.c.l.bf16 %v854_v34 }
 0x14c   :  { %1877 = vmatmul.mubr.msk.f32.gmra.mrb[28].mxu0 %vm489_vm8, %v2338_v37  ;;  %v857_v37 = vunpack.c.l.bf16 %v853_v31  ;;  %v873_v31 = vunpack.c.l.bf16 %v867_v3 }
 0x14d   :  { %1893 = vmatmul.mubr.msk.f32.gmra.mrb[28].mxu1 %vm489_vm8, %v2343_v38  ;;  %1879 = vmatprep.mubr.msk.f32.mxu0 %vm489_vm8, %v2348_v39  ;;  %v855_v38 = vld [vmem:[#allocation2 + $0x30] sm:$0xff] }
 0x14e   :  { %1895 = vmatprep.mubr.msk.f32.mxu1 %vm489_vm8, %v2353_v40  ;;  %v862_v54 = vunpack.c.h.bf16 %v855_v38  ;;  %v861_v60 = vunpack.c.l.bf16 %v855_v38 }
 0x150   :  { %1880 = vmatmul.mubr.msk.f32.gmra.mrb[30].mxu0 %vm489_vm8, %v2366_v41 }
 0x151   :  { %1896 = vmatmul.mubr.msk.f32.gmra.mrb[30].mxu1 %vm489_vm8, %v2371_v42  ;;  %1902 = vmatprep.mubr.msk.f32.mxu0 %vm2132_vm10, %v2128_v6  ;;  %v869_v42 = vunpack.c.l.bf16 %v865_v32 }
 0x152   :  { %1909 = vmatprep.mubr.msk.f32.mxu1 %vm2132_vm10, %v2128_v6 }
 0x155   :  { %1910 = vmatmul.mubr.msk.f32.vlgmr.msra.gmra.mrb[32].mxu1 %vm489_vm8, %v2382_v43 }
 0x156   :  { %1923 = vmatprep.mubr.msk.f32.mxu1 %vm2132_vm10, %v2128_v6 }
 0x217   :  { %v1872_v35 = vpop.f32.mrb[24].mxu0 }
 0x218   :  { %v983_v39 = vadd.f32 %v1872_v35, %v858_v33  ;;  %v1888_v40 = vpop.f32.mrb[24].mxu1  ;;  %v943_v41 = vpop.f32.mrb[25].mxu0  ;;  %v864_v35 = vunpack.c.h.bf16 %v856_v45 }
 0x219   :  { %v1096_v47 = vadd.f32 %v1888_v40, %v870_v36  ;;  %v982_v48 = vadd.f32 %v943_v41, %v857_v37  ;;  %v1056_v49 = vpop.f32.mrb[25].mxu1 }
 0x21a   :  { %v1104_v52 = vsub.f32 0.0, %v983_v39  ;;  %v1095_v51 = vadd.f32 %v1056_v49, %v869_v42 }
 0x21b   :  { %v1146_v55 = vsub.f32 0.0, %v1096_v47  ;;  %v1103_v57 = vsub.f32 0.0, %v982_v48  ;;  %v1875_v58 = vpop.f32.mrb[26].mxu0 }
 0x21c   :  { %v1111_v61 = vmul.f32 1.442695, %v1104_v52  ;;  %v1145_v62 = vsub.f32 0.0, %v1095_v51  ;;  %v985_v63 = vadd.f32 %v1875_v58, %v860_v50  ;;  %v1891_v0 = vpop.f32.mrb[26].mxu1  ;;  %v953_v1 = vpop.f32.mrb[27].mxu0 }
 0x21d   :  { %v1153_v4 = vmul.f32 1.442695, %v1146_v55  ;;  %v1109_v5 = vmul.f32 1.442695, %v1103_v57  ;;  %v1098_v7 = vadd.f32 %v1891_v0, %v872_v59  ;;  %v984_v8 = vadd.f32 %v953_v1, %v859_v53  ;;  %v1066_v10 = vpop.f32.mrb[27].mxu1 }
 0x21e   :  { %2032 = vpow2.f32 %v1111_v61  ;;  %v1151_v13 = vmul.f32 1.442695, %v1145_v62  ;;  %v1106_v14 = vsub.f32 0.0, %v985_v63  ;;  %v1097_v15 = vadd.f32 %v1066_v10, %v871_v2  ;;  %v868_v62 = vld [vmem:[#allocation3 + $0x18] sm:$0xff] }
 0x21f   :  { %2034 = vpow2.f32 %v1153_v4  ;;  %v1148_v16 = vsub.f32 0.0, %v1098_v7  ;;  %v1105_v17 = vsub.f32 0.0, %v984_v8  ;;  %v1878_v18 = vpop.f32.mrb[28].mxu0  ;;  %v876_v3 = vunpack.c.h.bf16 %v868_v62 }
 0x220   :  { %2036 = vpow2.f32 %v1109_v5  ;;  %v1115_v20 = vmul.f32 1.442695, %v1106_v14  ;;  %v1147_v21 = vsub.f32 0.0, %v1097_v15  ;;  %v987_v22 = vadd.f32 %v1878_v18, %v862_v54  ;;  %v1894_v23 = vpop.f32.mrb[28].mxu1  ;;  %v963_v24 = vpop.f32.mrb[29].mxu0 }
 0x221   :  { %2038 = vpow2.f32 %v1151_v13  ;;  %v1157_v25 = vmul.f32 1.442695, %v1148_v16  ;;  %v1113_v26 = vmul.f32 1.442695, %v1105_v17  ;;  %v1100_v28 = vadd.f32 %v1894_v23, %v874_v19  ;;  %v1076_v44 = vpop.f32.mrb[29].mxu1 }
 0x222   :  { %2040 = vpow2.f32 %v1115_v20  ;;  %v1155_v29 = vmul.f32 1.442695, %v1147_v21  ;;  %v986_v30 = vadd.f32 %v963_v24, %v861_v60  ;;  %v1108_v33 = vsub.f32 0.0, %v987_v22 }
 0x223   :  { %2042 = vpow2.f32 %v1157_v25  ;;  %v1881_v32 = vpop.f32.mrb[30].mxu0  ;;  %v1099_v34 = vadd.f32 %v1076_v44, %v873_v31  ;;  %v1150_v38 = vsub.f32 0.0, %v1100_v28  ;;  %v863_v5 = vunpack.c.l.bf16 %v856_v45 }
 0x224   :  { %2044 = vpow2.f32 %v1113_v26  ;;  %v1897_v36 = vpop.f32.mrb[30].mxu1  ;;  %v973_v37 = vpop.f32.mrb[31].mxu0  ;;  %v1107_v40 = vsub.f32 0.0, %v986_v30  ;;  %v989_v41 = vadd.f32 %v1881_v32, %v864_v35  ;;  %v1119_v46 = vmul.f32 1.442695, %v1108_v33 }
 0x225   :  { %2046 = vpow2.f32 %v1155_v29  ;;  %v1086_v39 = vpop.f32.mrb[31].mxu1  ;;  %v1149_v47 = vsub.f32 0.0, %v1099_v34  ;;  %v1161_v50 = vmul.f32 1.442695, %v1150_v38  ;;  %v1102_v7 = vadd.f32 %v1897_v36, %v876_v3 }
 0x226   :  { %v1117_v51 = vmul.f32 1.442695, %v1107_v40  ;;  %2048 = vtanh.f32 %v989_v41  ;;  %v875_v8 = vunpack.c.l.bf16 %v868_v62  ;;  %v988_v13 = vadd.f32 %v973_v37, %v863_v5 }
 0x227   :  { %v1159_v55 = vmul.f32 1.442695, %v1149_v47 }
 0x228   :  { %v2033_v42 = vpop.eup %2032  ;;  %v1101_v15 = vadd.f32 %v1086_v39, %v875_v8  ;;  %v1341_v3 = vpop.f32.mrb[32].mxu1 }
 0x229   :  { %v2035_v48 = vpop.eup %2034  ;;  %v1122_v49 = vadd.f32 1.0, %v2033_v42 }
 0x22a   :  { %v2037_v52 = vpop.eup %2036  ;;  %v1164_v58 = vadd.f32 1.0, %v2035_v48 }
 0x22b   :  { %v2039_v53 = vpop.eup %2038  ;;  %2050 = vrcp.f32 %v1122_v49  ;;  %v1121_v61 = vadd.f32 1.0, %v2037_v52 }
 0x22c   :  { %v2041_v54 = vpop.eup %2040  ;;  %2052 = vpow2.f32 %v1119_v46  ;;  %v1163_v4 = vadd.f32 1.0, %v2039_v53 }
 0x22d   :  { %v2043_v57 = vpop.eup %2042  ;;  %v1124_v59 = vadd.f32 1.0, %v2041_v54  ;;  %2054 = vpow2.f32 %v1161_v50 }
 0x22e   :  { %v2045_v60 = vpop.eup %2044  ;;  %2056 = vpow2.f32 %v1117_v51  ;;  %v1166_v0 = vadd.f32 1.0, %v2043_v57 }
 0x22f   :  { %v2047_v63 = vpop.eup %2046  ;;  %2058 = vrcp.f32 %v1124_v59  ;;  %v1123_v1 = vadd.f32 1.0, %v2045_v60 }
 0x230   :  { %2060 = vpow2.f32 %v1159_v55  ;;  %v1165_v2 = vadd.f32 1.0, %v2047_v63  ;;  %v2049_v10 = vpop.eup %2048  ;;  %v1407_v63 = vld [vmem:[#allocation5 + $0x10] sm:$0xff] }
 0x231   :  { %2062 = vrcp.f32 %v1164_v58 }
 0x232   :  { %2064 = vrcp.f32 %v1121_v61 }
 0x233   :  { %2066 = vrcp.f32 %v1166_v0  ;;  %v1408_v0 = vld [vmem:[#allocation5 + $0x18] sm:$0xff] }
 0x234   :  { %2068 = vrcp.f32 %v1123_v1  ;;  %v1200_v1 = vpop.permute.xlu0 %1199 }
 0x235   :  { %v2051_v14 = vpop.eup %2050  ;;  %2070 = vrcp.f32 %v1165_v2  ;;  %v1953_v2 = vpack.c.bf16 %v1408_v0, %v1407_v63 }
 0x236   :  { %v2053_v16 = vpop.eup %2052  ;;  %2072 = vrcp.f32 %v1163_v4  ;;  %v1138_v17 = vmul.f32 %v2051_v14, %v2049_v10  ;;  %v1911_v4 = vpop.f32.mrb[33].mxu1 }
 0x237   :  { %v2055_v18 = vpop.eup %2054  ;;  %2074 = vtanh.f32 %v1102_v7  ;;  %v1126_v21 = vadd.f32 1.0, %v2053_v16 }
 0x238   :  { %v2057_v19 = vpop.eup %2056  ;;  %2076 = vtanh.f32 %v988_v13  ;;  %v1168_v29 = vadd.f32 1.0, %v2055_v18  ;;  %v1348_v5 = vpop.permute.xlu0 %1347 }
 0x239   :  { %v2059_v20 = vpop.eup %2058  ;;  %2078 = vtanh.f32 %v1101_v15  ;;  %v1125_v31 = vadd.f32 1.0, %v2057_v19 }
 0x23a   :  { %v2061_v22 = vpop.eup %2060  ;;  %v1136_v23 = vmul.f32 %v2059_v20, %v2401_v56  ;;  %2080 = vrcp.f32 %v1126_v21 }
 0x23b   :  { %v2063_v24 = vpop.eup %2062  ;;  %v1167_v34 = vadd.f32 1.0, %v2061_v22 }
 0x23c   :  { %v2065_v25 = vpop.eup %2064  ;;  %v1140_v26 = vadd.f32 %v1138_v17, %v1136_v23 }
 0x23d   :  { %v2067_v28 = vpop.eup %2066 }
 0x23e   :  { %v2069_v44 = vpop.eup %2068  ;;  %2082 = vtanh.f32 %v1140_v26  ;;  %v1178_v32 = vmul.f32 %v2067_v28, %v2404_v9 }
 0x23f   :  { %v2071_v45 = vpop.eup %2070  ;;  %v1135_v35 = vmul.f32 %v2069_v44, %v2406_v11  ;;  %2084 = vrcp.f32 %v1168_v29 }
 0x240   :  { %v2073_v30 = vpop.eup %2072  ;;  %v1177_v56 = vmul.f32 %v2071_v45, %v2409_v12  ;;  %2086 = vrcp.f32 %v1125_v31 }
 0x241   :  { %v2075_v33 = vpop.eup %2074  ;;  %2088 = vrcp.f32 %v1167_v34  ;;  %v1365_v34 = vld [vmem:[%s2524_s0] sm:$0x1] }
 0x242   :  { %v2077_v36 = vpop.eup %2076  ;;  %v1180_v37 = vmul.f32 %v2075_v33, %v2063_v24 }
 0x243   :  { %v2079_v38 = vpop.eup %2078  ;;  %v1137_v39 = vmul.f32 %v2077_v36, %v2065_v25 }
 0x244   :  { %v1182_v40 = vadd.f32 %v1180_v37, %v1178_v32  ;;  %v1179_v41 = vmul.f32 %v2079_v38, %v2073_v30  ;;  %v2081_v47 = vpop.eup %2080  ;;  %v1366_v37 = vcvt.s32.f32 %v1365_v34 }
 0x245   :  { %v1139_v42 = vadd.f32 %v1137_v39, %v1135_v35  ;;  %v1564_v39 = vld [vmem:[%s2524_s0 + $0x1] sm:$0x1]  ;;  %s2134_s0 = smov [#allocation6]  }
 0x246   :  { %2090 = vtanh.f32 %v1182_v40  ;;  %v1181_v46 = vadd.f32 %v1179_v41, %v1177_v56  ;;  %s1605_s23 = sshll.u32 %s2134_s0, 4  ;;  %s1606_s23 = int_to_ptr.vmem [resolvable:$true] %s1605_s23 }
 0x247   :  { %2092 = vtanh.f32 %v1139_v42  ;;  %s2104_s1 = scalar_lea.vmem %s1606_s23, 256  ;;  %p2109_p1 = scmp.lt.s32.totalorder %s1606_s23, %s1606_s23 }
 0x248   :  { %v2083_v9 = vpop.eup %2082  ;;  %2094 = vtanh.f32 %v1181_v46  ;;  %p2105_p0 = scmp.ne.s32.totalorder %s1606_s23, %s2104_s1  ;;  %p2110_p2 = scmp.lt.s32.totalorder %s2104_s1, %s2104_s1 }
 0x249   :  { %v1144_v48 = vmul.f32 %v2083_v9, %v2081_v47  ;;  %v2085_v11 = vpop.eup %2084 }
 0x24a   :  { %v2087_v49 = vpop.eup %2086  ;;  %p2111_p3 = por %p2110_p2, %p2109_p1 }
 0x24b   :  { %1189 = vst.msk [vmem:[#allocation4 + $0x18] sm:$0xff] %vm259_vm9, %v1144_v48  ;;  %v2089_v12 = vpop.eup %2088 }
 0x24c   :  { %p2112_p4 = pnand %p2111_p3, %p2105_p0 }
 0x250   :  { %v2091_v50 = vpop.eup %2090 }
 0x251   :  { %v2093_v52 = vpop.eup %2092  ;;  %v1186_v51 = vmul.f32 %v2091_v50, %v2085_v11 }
 0x252   :  { %v2095_v53 = vpop.eup %2094  ;;  %v1143_v54 = vmul.f32 %v2093_v52, %v2087_v49  ;;  %v1406_v57 = vld [vmem:[#allocation4 + $0x18] sm:$0xff] }
 0x253   :  { %1191 = vst.msk [vmem:[#allocation5 + $0x8] sm:$0xff] %vm259_vm9, %v1186_v51  ;;  %v1185_v55 = vmul.f32 %v2095_v53, %v2089_v12 }
 0x254   :  { %1188 = vst.msk [vmem:[#allocation4 + $0x10] sm:$0xff] %vm259_vm9, %v1143_v54 }
 0x255   :  { %1190 = vst.msk [vmem:[#allocation5] sm:$0xff] %vm259_vm9, %v1185_v55 }
 0x25a   :  { %v1197_v58 = vld [vmem:[#allocation5 + $0x8] sm:$0xff] }
 0x25b   :  { %v1405_v59 = vld [vmem:[#allocation4 + $0x10] sm:$0xff] }
 0x25c   :  { %v1196_v60 = vld [vmem:[#allocation5] sm:$0xff]  ;;  %v1956_v61 = vpack.c.bf16 %v1406_v57, %v1405_v59 }
 0x25d   :  { %v1947_v62 = vpack.c.bf16 %v1197_v58, %v1196_v60 }
 0x25e   :  { %1957 = vmatpush3.bf16.msra.mxu1 %v1956_v61 }
 0x25f   :  { %1948 = vmatpush3.bf16.msra.mxu0 %v1947_v62 }
 0x260   :  { %1952 = vmatprep.subr.bf16.mxu0 %v2131_v27 }
 0x261   :  { %1924 = vmatmul.mubr.msk.f32.vlgmr.msra.gmra.mrb[34].mxu1 %vm489_vm8, %v2382_v43 }
 0x262   :  { %1903 = vmatmul.mubr.msk.f32.vlgmr.msra.gmra.mrb[32].mxu0 %vm489_vm8, %v1200_v1 }
 0x263   :  { %1954 = vmatpush3.bf16.msra.mxu0 %v1953_v2  ;;  %1916 = vmatprep.mubr.msk.f32.mxu0 %vm2132_vm10, %v2128_v6 }
 0x266   :  { %1917 = vmatmul.mubr.msk.f32.vlgmr.msra.gmra.mrb[34].mxu0 %vm489_vm8, %v1200_v1 }
 0x334   :  { %v1545_v7 = vpop.f32.mrb[34].mxu1 }
 0x335   :  { %v1269_v8 = vpop.f32.mrb[32].mxu0  ;;  %v1925_v10 = vpop.f32.mrb[35].mxu1 }
 0x336   :  { %v1342_v13 = vadd.f32 %v1341_v3, %v1269_v8  ;;  %v1904_v27 = vpop.f32.mrb[33].mxu0 }
 0x338   :  { %v1350_v14 = vadd.f32 %v1348_v5, %v1342_v13 }
 0x339   :  { %v1475_v15 = vpop.f32.mrb[34].mxu0 }
 0x33a   :  { %v1352_v16 = vrot.slane %v1350_v14, 7  ;;  %v1546_v43 = vadd.f32 %v1545_v7, %v1475_v15  ;;  %v1918_v17 = vpop.f32.mrb[35].mxu0 }
 0x33c   :  { %v1354_v18 = vsub.f32 %v1350_v14, %v1352_v16  ;;  %v1549_v19 = vadd.f32 %v1546_v43, %v1348_v5  ;;  %vm2474_vm11 = vcmp.gt.f32.partialorder %v1350_v14, %v1352_v16 }
 0x33d   :  { %v1692_v45 = vsel %vm2474_vm11, 1.0, %v2128_v6 }
 0x33e   :  { %v1355_v20 = vsub.f32 0.0, %v1354_v18  ;;  %v1551_v21 = vrot.slane %v1549_v19, 7  ;;  %v1371_v30 = vsub.f32 1.0, %v1692_v45  ;;  %v1368_v56 = vrot.slane %v1692_v45, 1 }
 0x33f   :  { %v1386_v53 = vrot.slane %v1692_v45, 4  ;;  %v1391_v58 = vrot.slane %v1692_v45, 2 }
 0x340   :  { %v1356_v22 = vmul.f32 1.442695, %v1355_v20  ;;  %v1553_v23 = vsub.f32 %v1549_v19, %v1551_v21  ;;  %vm2481_vm12 = vcmp.gt.f32.partialorder %v1549_v19, %v1551_v21  ;;  %v1372_v35 = vmul.f32 0.0, %v1371_v30 }
 0x341   :  { %v1695_v33 = vsel %vm2481_vm12, 1.0, %v2128_v6  ;;  %v1370_v46 = vmul.f32 %v1368_v56, %v1366_v37  ;;  %v1565_v6 = vcvt.s32.f32 %v1564_v39 }
 0x342   :  { %2096 = vpow2.f32 %v1356_v22  ;;  %v1554_v24 = vsub.f32 0.0, %v1553_v23  ;;  %v1570_v36 = vsub.f32 1.0, %v1695_v33  ;;  %v1374_v38 = vrot.slane %v1372_v35, 1 }
 0x343   :  { %v1567_v47 = vrot.slane %v1695_v33, 1  ;;  %v1585_v7 = vrot.slane %v1695_v33, 4  ;;  %v1590_v27 = vrot.slane %v1695_v33, 2 }
 0x344   :  { %v1555_v25 = vmul.f32 1.442695, %v1554_v24  ;;  %v1571_v41 = vmul.f32 0.0, %v1570_v36  ;;  %v1376_v48 = vadd.f32 %v1374_v38, %v1370_v46 }
 0x345   :  { %v1569_v57 = vmul.f32 %v1567_v47, %v1565_v6 }
 0x346   :  { %2098 = vpow2.f32 %v1555_v25  ;;  %v1573_v50 = vrot.slane %v1571_v41, 1  ;;  %v1389_v60 = vrot.slane %v1376_v48, 2 }
 0x348   :  { %v1575_v0 = vadd.f32 %v1573_v50, %v1569_v57 }
 0x34a   :  { %v1588_v13 = vrot.slane %v1575_v0, 2 }
 0x34c   :  { %v2097_v28 = vpop.eup %2096 }
 0x34d   :  { %v1358_v44 = vadd.f32 1.0, %v2097_v28 }
 0x34f   :  { %2100 = vrcp.f32 %v1358_v44 }
 0x350   :  { %v2099_v31 = vpop.eup %2098 }
 0x351   :  { %v1557_v32 = vadd.f32 1.0, %v2099_v31 }
 0x353   :  { %2102 = vrcp.f32 %v1557_v32 }
 0x359   :  { %v2101_v40 = vpop.eup %2100 }
 0x35a   :  { %v1360_v42 = vsub.f32 1.0, %v2101_v40  ;;  %v1381_v49 = vrot.slane %v2101_v40, 6 }
 0x35c   :  { %v1364_v9 = vsel %vm2474_vm11, %v2101_v40, %v1360_v42  ;;  %v1378_v11 = vrot.slane %v1360_v42, 7 }
 0x35d   :  { %v1384_v12 = vrot.slane %v1364_v9, 5  ;;  %v2103_v52 = vpop.eup %2102 }
 0x35e   :  { %v1394_v51 = vsel %vm1393_vm13, %v1350_v14, %v1378_v11  ;;  %v1559_v55 = vsub.f32 1.0, %v2103_v52  ;;  %v1580_v1 = vrot.slane %v2103_v52, 6 }
 0x35f   :  { %v1395_v54 = vsel %vm106_vm1, %v1394_v51, %v1381_v49 }
 0x360   :  { %v1397_v59 = vsel %vm1396_vm14, %v1395_v54, %v1384_v12  ;;  %v1563_v61 = vsel %vm2481_vm12, %v2103_v52, %v1559_v55  ;;  %v1577_v62 = vrot.slane %v1559_v55, 7 }
 0x361   :  { %v1399_v63 = vsel %vm1398_vm15, %v1397_v59, %v1386_v53  ;;  %v1583_v2 = vrot.slane %v1563_v61, 5 }
 0x362   :  { %v1401_v3 = vsel %vm1400_vm0, %v1399_v63, %v1389_v60  ;;  %v1592_v4 = vsel %vm1393_vm13, %v1549_v19, %v1577_v62 }
 0x363   :  { %v1403_v5 = vsel %vm1402_vm2, %v1401_v3, %v1391_v58  ;;  %v1593_v8 = vsel %vm106_vm1, %v1592_v4, %v1580_v1 }
 0x364   :  { %1404 = vst.msk [vmem:[#allocation6] sm:$0xff] %vm259_vm9, %v1403_v5  ;;  %v1594_v10 = vsel %vm1396_vm14, %v1593_v8, %v1583_v2 }
 0x365   :  { %v1595_v14 = vsel %vm1398_vm15, %v1594_v10, %v1585_v7 }
 0x366   :  { %v1596_v15 = vsel %vm1400_vm0, %v1595_v14, %v1588_v13 }
 0x367   :  { %v1597_v16 = vsel %vm1402_vm2, %v1596_v15, %v1590_v27 }
 0x368   :  { %1599 = vst.msk [vmem:[#allocation6 + $0x8] sm:$0xff] %vm259_vm9, %v1597_v16 }
 0x369   :  { %2115 = shalt.err (!%p2112_p4)
}
 0x36a   :  { %s2116_s26 = scalar_lea.hbm %s2531_s7, 256 }
 0x36b   :  { %p2117_p5 = scmp.ne.s32.totalorder %s2531_s7, %s2116_s26  ;;  %p2120_p6 = scmp.lt.u32.totalorder %s2116_s26, %s2531_s7 }
 0x36d   :  { %p2122_p7 = pnand %p2120_p6, %p2117_p5 }
 0x36f   :  { %2125 = shalt.err (!%p2122_p7)
}
 0x370   :  { %s2135_s8 = smov 128   ;;  %s2136_s9 = smov 8  }
 0x371   :  { %1611 = dma.vmem_to_hbm [thread:$0]  %s1606_s23, 256, %s2531_s7, [#allocation7], %s2135_s8, %s2135_s8, %s2136_s9  }
 0x372   :  { %2126 = dma.done.wait [#allocation7], 256  }
 0x373   :  { %2127 = vsyncadd [#allocation7], 4294967040 }
 0x374   :  { %1615 = vsyncpa [#allocation7], 1 }

</bundles_post_ra>
